<compile_context>
chip_gen: v7x
topology: tpu7x:2x2x1
jax: 0.10.0
libtpu: 0.0.40
codegen_flags: <defaults>
</compile_context>

<pallas_src>
import jax
import jax.numpy as jnp
from jax.experimental import pallas as pl
from jax.experimental.pallas import tpu as pltpu


def _attn_decoder_gru_kernel(
    tok_ref,        # SMEM (T, B) int32 -- scalar prefetch (decoder input per step)
    emb_tbl_ref,    # (V, E)   embedding table (resident)
    h_in_ref,       # (2, B, H) initial hidden (resident, read only at step 0)
    enc_ref,        # (S, B, 2H) encoder outputs, time-major (resident)
    w_gru_ref,      # (2, 6, Din, H) per-layer per-gate GRU weights [ih_r,ih_z,ih_n,hh_r,hh_z,hh_n]
    w_misc_ref,     # (5, R, C) padded [w_attn_h, w_attn_e, w_comb_e, w_comb_a, w_out]
    b_ref,          # (15, 128) padded bias rows
    logp_ref,       # out (1, B, V)   per-step log-probs
    h_ref,          # out (2, B, H)   hidden state, resident across the step axis
    attnw_ref,      # out (1, B, S)   per-step attention weights
):
    f32 = jnp.float32
    t = pl.program_id(0)

    V, E = emb_tbl_ref.shape
    S, B, EH = enc_ref.shape            # EH = 2H
    H = h_in_ref.shape[-1]

    # Seed the resident hidden-state block from the initial hidden at step 0.
    @pl.when(t == 0)
    def _():
        h_ref[...] = h_in_ref[...]

    h0 = h_ref[0]                        # (B, H)  layer-0 hidden
    h1 = h_ref[1]                        # (B, H)  layer-1 hidden

    # ---- embedding lookup inside the kernel: one-hot @ table (MXU) -------------
    sub = jax.lax.broadcasted_iota(jnp.int32, (B, V), 0)
    lane = jax.lax.broadcasted_iota(jnp.int32, (B, V), 1)
    onehot = jnp.zeros((B, V), f32)
    for b in range(B):                   # B is tiny & static
        onehot = jnp.where((sub == b) & (lane == tok_ref[t, b]), 1.0, onehot)
    emb = jnp.dot(onehot, emb_tbl_ref[...], preferred_element_type=f32)   # (B, E)

    # ---- attn_weights = softmax(Linear(cat([hidden[0], embedded[0]]))) ---------
    attn_logits = (
        jnp.dot(h0, w_misc_ref[0, :H, :S], preferred_element_type=f32)
        + jnp.dot(emb, w_misc_ref[1, :E, :S], preferred_element_type=f32)
        + b_ref[0:1, :S])                                                  # (B, S)
    attn_logits = attn_logits - jnp.max(attn_logits, axis=-1, keepdims=True)
    attn_exp = jnp.exp(attn_logits)
    denom = jnp.sum(attn_exp, axis=-1, keepdims=True)
    attn_w = attn_exp * pl.reciprocal(denom, approx=True)                  # (B, S)

    # ---- attn_applied = bmm(attn_w.unsqueeze(1), encoder_output).squeeze(1) ----
    # Unrolled weighted sum over time-major encoder outputs (S is small & static).
    enc = enc_ref[...]                                                     # (S, B, 2H)
    attn_applied = attn_w[:, 0:1] * enc[0]
    for s in range(1, S):
        attn_applied = attn_applied + attn_w[:, s:s + 1] * enc[s]          # (B, 2H)

    # ---- gru_input = relu(Linear(cat([embedded[0], attn_applied]))) ------------
    gru_in = jnp.maximum(
        jnp.dot(emb, w_misc_ref[2, :E, :E], preferred_element_type=f32)
        + jnp.dot(attn_applied, w_misc_ref[3, :EH, :E], preferred_element_type=f32)
        + b_ref[1:2, :E], 0.0)                                             # (B, E)

    # ---- 2-layer GRU, one timestep. PyTorch gate order [r, z, n]; per-gate dots
    # so every gate result starts at lane 0 (no lane-offset slicing).
    def gru_cell(x, h, layer, in_dim):
        base = 2 + 6 * layer   # bias row base for this layer

        def gi(g):             # x @ W_ih_g + b_ih_g
            return (jnp.dot(x, w_gru_ref[layer, g, :in_dim, :],
                            preferred_element_type=f32)
                    + b_ref[base + g:base + g + 1, :H])

        def gh(g):             # h @ W_hh_g + b_hh_g
            return (jnp.dot(h, w_gru_ref[layer, 3 + g, :H, :],
                            preferred_element_type=f32)
                    + b_ref[base + 3 + g:base + 4 + g, :H])

        r = jax.nn.sigmoid(gi(0) + gh(0))
        z = jax.nn.sigmoid(gi(1) + gh(1))
        n = jnp.tanh(gi(2) + r * gh(2))
        return (1.0 - z) * n + z * h

    h0_new = gru_cell(gru_in, h0, 0, E)
    # TODO(synk): inter-layer dropout (p=0.1) applies only in training mode; this is
    # the eval-mode forward, so it is omitted.
    h1_new = gru_cell(h0_new, h1, 1, H)

    # ---- output = log_softmax(Linear(output[0])) -------------------------------
    logits = (jnp.dot(h1_new, w_misc_ref[4, :H, :V], preferred_element_type=f32)
              + b_ref[14:15, :V])                                          # (B, V)
    logits = logits - jnp.max(logits, axis=-1, keepdims=True)
    lse = jnp.log(jnp.sum(jnp.exp(logits), axis=-1, keepdims=True))

    logp_ref[0] = (logits - lse).astype(logp_ref.dtype)
    attnw_ref[0] = attn_w.astype(attnw_ref.dtype)
    # Carry the new hidden state to the next grid step (reads above precede writes).
    h_ref[0] = h0_new.astype(h_ref.dtype)
    h_ref[1] = h1_new.astype(h_ref.dtype)


def attn_decoder_gru_decode(tokens, hidden, encoder_output, params):
    """Run T decoder steps (teacher-forced token per step) in ONE pallas_call.

    tokens:         (T, B) int32 decoder input token for each step
    hidden:         (2, B, H) float32 initial GRU hidden state
    encoder_output: (B, S, 2H) float32
    Returns (log_probs (T,B,V), final_hidden (2,B,H), attn_weights (T,B,1,S)).
    """
    T, B = tokens.shape
    H = hidden.shape[-1]
    S = encoder_output.shape[1]
    V, E = params["embedding"].shape

    # Hoisted out of the per-step path: time-major encoder outputs, done once.
    enc_t = jnp.transpose(encoder_output, (1, 0, 2)).astype(jnp.float32)   # (S, B, 2H)

    grid_spec = pltpu.PrefetchScalarGridSpec(
        num_scalar_prefetch=1,
        grid=(T,),
        in_specs=[
            # Constant index_maps -> DMA'd once, resident in VMEM for all T steps.
            pl.BlockSpec((V, E), lambda t, tok: (0, 0)),                   # embedding
            pl.BlockSpec((2, B, H), lambda t, tok: (0, 0, 0)),             # init hidden
            pl.BlockSpec((S, B, 2 * H), lambda t, tok: (0, 0, 0)),         # encoder out
            pl.BlockSpec(params["w_gru"].shape, lambda t, tok: (0, 0, 0, 0)),
            pl.BlockSpec(params["w_misc"].shape, lambda t, tok: (0, 0, 0)),
            pl.BlockSpec(params["biases"].shape, lambda t, tok: (0, 0)),
        ],
        out_specs=(
            pl.BlockSpec((1, B, V), lambda t, tok: (t, 0, 0)),             # per-step logp
            pl.BlockSpec((2, B, H), lambda t, tok: (0, 0, 0)),             # resident hidden
            pl.BlockSpec((1, B, S), lambda t, tok: (t, 0, 0)),             # per-step attn
        ),
    )

    logp, h_new, attn_w = pl.pallas_call(
        _attn_decoder_gru_kernel,
        out_shape=(
            jax.ShapeDtypeStruct((T, B, V), jnp.float32),
            jax.ShapeDtypeStruct((2, B, H), jnp.float32),
            jax.ShapeDtypeStruct((T, B, S), jnp.float32),
        ),
        grid_spec=grid_spec,
        compiler_params=pltpu.CompilerParams(
            dimension_semantics=("arbitrary",)),   # sequential dependence via hidden
    )(tokens.astype(jnp.int32), params["embedding"], hidden.astype(jnp.float32),
      enc_t, params["w_gru"], params["w_misc"], params["biases"])

    return logp, h_new, attn_w[:, :, None, :]       # attn_weights (T, B, 1, S)


def attn_decoder_gru_forward(input_tokens, hidden, encoder_output, params):
    """Single AttnDecoderGRU.forward step, matching the torch signature.

    input_tokens (1, B) -> (log_probs (B,V), hidden (2,B,H), attn_weights (B,1,S)).
    """
    logp, h_new, attn_w = attn_decoder_gru_decode(
        input_tokens, hidden, encoder_output, params)
    return logp[0], h_new, attn_w[0]


def make_params(key, vocab_size, embedding_dim, hidden_size, seq_length):
    """Parameter init mirroring AttnDecoderGRU.__init__, packed into 4 slabs.

    All Linear/GRU weights are stored transposed (in_dim, out_dim); weights whose
    PyTorch input is a concat are split row-wise; GRU weights are split per gate.
    """
    H, E, S, V = hidden_size, embedding_dim, seq_length, vocab_size
    keys = jax.random.split(key, 32)
    ki = iter(keys)

    def uni(shape, bound):
        return jax.random.uniform(next(ki), shape, jnp.float32, -bound, bound)

    # ---- raw (pre-transposed) parameters ---------------------------------------
    embedding = jax.random.normal(next(ki), (V, E), jnp.float32)   # frozen table

    ka = (H + E) ** -0.5
    w_attn_t = uni((H + E, S), ka)          # attn: Linear(H+E, S), input cat([h0, emb])
    b_attn = uni((S,), ka)

    kc = (E + 2 * H) ** -0.5
    w_comb_t = uni((E + 2 * H, E), kc)      # attn_with_input: Linear(E+2H, E)
    b_comb = uni((E,), kc)

    kg = H ** -0.5
    eye3_t = jnp.concatenate([jnp.eye(H, dtype=jnp.float32)] * 3, axis=1)  # (H, 3H)
    gru_layers = []
    for in_dim in (E, H):                   # layer 0 input E, layer 1 input H
        gru_layers.append(dict(
            in_dim=in_dim,
            w_ih_t=uni((in_dim, 3 * H), kg),
            w_hh_t=eye3_t,                  # identity init, as in the module
            b_ih=uni((3 * H,), kg),
            b_hh=uni((3 * H,), kg)))

    ko = H ** -0.5
    w_out_t = uni((H, V), ko)               # out: Linear(H, V)
    b_out = uni((V,), ko)

    # ---- pack into a few VMEM-friendly slabs ------------------------------------
    # GRU: (2 layers, 6, Din, H); axis1 = [ih_r, ih_z, ih_n, hh_r, hh_z, hh_n].
    d_in = max(E, H)
    w_gru = jnp.zeros((2, 6, d_in, H), jnp.float32)
    for l, layer in enumerate(gru_layers):
        for g in range(3):
            w_gru = w_gru.at[l, g, :layer["in_dim"], :].set(
                layer["w_ih_t"][:, g * H:(g + 1) * H])
            w_gru = w_gru.at[l, 3 + g, :H, :].set(
                layer["w_hh_t"][:, g * H:(g + 1) * H])

    # Misc mats: [w_attn_h, w_attn_e, w_comb_e, w_comb_a, w_out], zero-padded slab.
    mats = [w_attn_t[:H], w_attn_t[H:], w_comb_t[:E], w_comb_t[E:], w_out_t]
    rows = -(-max(m.shape[0] for m in mats) // 8) * 8
    cols = -(-max(m.shape[1] for m in mats) // 128) * 128
    w_misc = jnp.zeros((len(mats), rows, cols), jnp.float32)
    for i, m in enumerate(mats):
        w_misc = w_misc.at[i, :m.shape[0], :m.shape[1]].set(m)

    # Biases: one padded row each.
    # row 0: b_attn, 1: b_comb, 2..7: layer0 [ih_r,ih_z,ih_n,hh_r,hh_z,hh_n],
    # 8..13: layer1 same order, 14: b_out.
    bias_rows = [b_attn, b_comb]
    for layer in gru_layers:
        for g in range(3):
            bias_rows.append(layer["b_ih"][g * H:(g + 1) * H])
        for g in range(3):
            bias_rows.append(layer["b_hh"][g * H:(g + 1) * H])
    bias_rows.append(b_out)
    biases = jnp.zeros((len(bias_rows), 128), jnp.float32)
    for i, row in enumerate(bias_rows):
        biases = biases.at[i, :row.shape[0]].set(row)

    return {"embedding": embedding, "w_gru": w_gru, "w_misc": w_misc, "biases": biases}


if __name__ == "__main__":
    VOCAB = 50      # output_vocab_size
    EMBED = 32      # embedding_dim
    HIDDEN = 32     # decoder_hidden_size
    BATCH = 2
    SEQ = 8         # seq_length (attention span over encoder outputs)
    STEPS = 6       # number of fused decode steps

    key = jax.random.PRNGKey(0)
    k_param, k_tok, k_enc, k_hid = jax.random.split(key, 4)

    params = make_params(k_param, VOCAB, EMBED, HIDDEN, SEQ)

    tokens = jax.random.randint(k_tok, (STEPS, BATCH), 0, VOCAB, dtype=jnp.int32)
    hidden = jax.random.normal(k_hid, (2, BATCH, HIDDEN), jnp.float32)
    encoder_output = jax.random.normal(k_enc, (BATCH, SEQ, 2 * HIDDEN), jnp.float32)

    # Fused multi-step decode: one pallas_call for all STEPS tokens.
    log_probs, final_hidden, attn_weights = attn_decoder_gru_decode(
        tokens, hidden, encoder_output, params)
    jax.block_until_ready((log_probs, final_hidden, attn_weights))

    assert log_probs.shape == (STEPS, BATCH, VOCAB)
    assert final_hidden.shape == (2, BATCH, HIDDEN)
    assert attn_weights.shape == (STEPS, BATCH, 1, SEQ)

    # Single-step forward (matches the torch module signature); it must agree with
    # step 0 of the fused decode (same hidden, same first token).
    logp0, hid1, attnw0 = attn_decoder_gru_forward(
        tokens[0:1], hidden, encoder_output, params)
    jax.block_until_ready((logp0, hid1, attnw0))
    assert logp0.shape == (BATCH, VOCAB)
    assert hid1.shape == (2, BATCH, HIDDEN)
    assert attnw0.shape == (BATCH, 1, SEQ)
    assert jnp.allclose(logp0, log_probs[0], atol=1e-5)
    assert jnp.allclose(attnw0, attn_weights[0], atol=1e-5)
    # log-softmax rows normalize.
    assert jnp.allclose(jnp.sum(jnp.exp(log_probs), axis=-1), 1.0, atol=1e-4)

    print("KERNEL_OK")
</pallas_src>

<mosaic_0001>
module attributes {stable_mosaic.version = 11 : i64} {
  func.func @_attn_decoder_gru_kernel(%arg0: i32, %arg1: memref<6x2xi32, #tpu.memory_space<smem>>, %arg2: memref<50x32xf32, #tpu.memory_space<vmem>>, %arg3: memref<2x2x32xf32, #tpu.memory_space<vmem>>, %arg4: memref<8x2x64xf32, #tpu.memory_space<vmem>>, %arg5: memref<2x6x32x32xf32, #tpu.memory_space<vmem>>, %arg6: memref<5x64x128xf32, #tpu.memory_space<vmem>>, %arg7: memref<15x128xf32, #tpu.memory_space<vmem>>, %arg8: memref<1x2x50xf32, #tpu.memory_space<vmem>>, %arg9: memref<2x2x32xf32, #tpu.memory_space<vmem>>, %arg10: memref<1x2x8xf32, #tpu.memory_space<vmem>>) attributes {dimension_semantics = [#tpu.dimension_semantics<arbitrary>], iteration_bounds = array<i64: 6>, scalar_prefetch = 1 : i64, scratch_operands = 0 : i64, tpu.core_type = #tpu.core_type<tc>, window_params = [{pipeline_mode = #tpu.pipeline_mode<synchronous>, transform_indices = @transform_0, window_bounds = array<i64: 50, 32>}, {pipeline_mode = #tpu.pipeline_mode<synchronous>, transform_indices = @transform_1, window_bounds = array<i64: 2, 2, 32>}, {pipeline_mode = #tpu.pipeline_mode<synchronous>, transform_indices = @transform_2, window_bounds = array<i64: 8, 2, 64>}, {pipeline_mode = #tpu.pipeline_mode<synchronous>, transform_indices = @transform_3, window_bounds = array<i64: 2, 6, 32, 32>}, {pipeline_mode = #tpu.pipeline_mode<synchronous>, transform_indices = @transform_4, window_bounds = array<i64: 5, 64, 128>}, {pipeline_mode = #tpu.pipeline_mode<synchronous>, transform_indices = @transform_5, window_bounds = array<i64: 15, 128>}, {transform_indices = @transform_6, window_bounds = array<i64: 1, 2, 50>}, {pipeline_mode = #tpu.pipeline_mode<synchronous>, transform_indices = @transform_7, window_bounds = array<i64: 2, 2, 32>}, {transform_indices = @transform_8, window_bounds = array<i64: 1, 2, 8>}]} {
    %c0_i32 = arith.constant 0 : i32
    %0 = arith.cmpi eq, %arg0, %c0_i32 : i32
    %1 = arith.extui %0 : i1 to i32
    %c0_i32_0 = arith.constant 0 : i32
    %2 = arith.cmpi ne, %1, %c0_i32_0 : i32
    scf.if %2 {
      %c0_136 = arith.constant 0 : index
      %c0_137 = arith.constant 0 : index
      %c0_138 = arith.constant 0 : index
      %250 = vector.load %arg3[%c0_136, %c0_137, %c0_138] : memref<2x2x32xf32, #tpu.memory_space<vmem>>, vector<2x2x32xf32>
      %c0_139 = arith.constant 0 : index
      %c0_140 = arith.constant 0 : index
      %c0_141 = arith.constant 0 : index
      %251 = vector.load %arg9[%c0_139, %c0_140, %c0_141] : memref<2x2x32xf32, #tpu.memory_space<vmem>>, vector<2x2x32xf32>
      tpu.vector_store %arg9[%c0_139, %c0_140, %c0_141], %250 {strides = array<i32>} : memref<2x2x32xf32, #tpu.memory_space<vmem>>, vector<2x2x32xf32>,
    } else {
    }
    %c0 = arith.constant 0 : index
    %c0_1 = arith.constant 0 : index
    %c0_2 = arith.constant 0 : index
    %3 = vector.load %arg9[%c0, %c0_1, %c0_2] : memref<2x2x32xf32, #tpu.memory_space<vmem>>, vector<1x2x32xf32>
    %4 = vector.shape_cast %3 : vector<1x2x32xf32> to vector<2x32xf32>
    %c1 = arith.constant 1 : index
    %c0_3 = arith.constant 0 : index
    %c0_4 = arith.constant 0 : index
    %5 = vector.load %arg9[%c1, %c0_3, %c0_4] : memref<2x2x32xf32, #tpu.memory_space<vmem>>, vector<1x2x32xf32>
    %6 = vector.shape_cast %5 : vector<1x2x32xf32> to vector<2x32xf32>
    %7 = tpu.iota {dimensions = array<i32: 0>} : vector<2x50xi32>
    %8 = tpu.iota {dimensions = array<i32: 1>} : vector<2x50xi32>
    %cst = arith.constant 0.000000e+00 : f32
    %9 = vector.broadcast %cst : f32 to vector<2x50xf32>
    %c0_i32_5 = arith.constant 0 : i32
    %10 = vector.broadcast %c0_i32_5 : i32 to vector<2x50xi32>
    %11 = arith.cmpi eq, %7, %10 : vector<2x50xi32>
    %12 = arith.index_cast %arg0 : i32 to index
    %c0_6 = arith.constant 0 : index
    %13 = memref.load %arg1[%12, %c0_6] : memref<6x2xi32, #tpu.memory_space<smem>>
    %14 = vector.broadcast %13 : i32 to vector<2x50xi32>
    %15 = arith.cmpi eq, %8, %14 : vector<2x50xi32>
    %16 = arith.andi %11, %15 : vector<2x50xi1>
    %cst_7 = arith.constant 1.000000e+00 : f32
    %17 = vector.broadcast %cst_7 : f32 to vector<2x50xf32>
    %18 = arith.select %16, %17, %9 : vector<2x50xi1>, vector<2x50xf32>
    %c1_i32 = arith.constant 1 : i32
    %19 = vector.broadcast %c1_i32 : i32 to vector<2x50xi32>
    %20 = arith.cmpi eq, %7, %19 : vector<2x50xi32>
    %21 = arith.index_cast %arg0 : i32 to index
    %c1_8 = arith.constant 1 : index
    %22 = memref.load %arg1[%21, %c1_8] : memref<6x2xi32, #tpu.memory_space<smem>>
    %23 = vector.broadcast %22 : i32 to vector<2x50xi32>
    %24 = arith.cmpi eq, %8, %23 : vector<2x50xi32>
    %25 = arith.andi %20, %24 : vector<2x50xi1>
    %cst_9 = arith.constant 1.000000e+00 : f32
    %26 = vector.broadcast %cst_9 : f32 to vector<2x50xf32>
    %27 = arith.select %25, %26, %18 : vector<2x50xi1>, vector<2x50xf32>
    %c0_10 = arith.constant 0 : index
    %c0_11 = arith.constant 0 : index
    %28 = vector.load %arg2[%c0_10, %c0_11] : memref<50x32xf32, #tpu.memory_space<vmem>>, vector<50x32xf32>
    %cst_12 = arith.constant dense<0.000000e+00> : vector<2x32xf32>
    %29 = tpu.matmul %27, %28, %cst_12 {dimension_numbers = #tpu.dot_dimension_numbers<[1], [0], [0], [1], [0, 0, 1, 1], [], []>} : vector<2x50xf32>, vector<50x32xf32>, vector<2x32xf32> -> vector<2x32xf32>
    %c0_13 = arith.constant 0 : index
    %c0_14 = arith.constant 0 : index
    %c0_15 = arith.constant 0 : index
    %30 = vector.load %arg6[%c0_13, %c0_14, %c0_15] : memref<5x64x128xf32, #tpu.memory_space<vmem>>, vector<1x32x8xf32>
    %31 = vector.shape_cast %30 : vector<1x32x8xf32> to vector<32x8xf32>
    %cst_16 = arith.constant dense<0.000000e+00> : vector<2x8xf32>
    %32 = tpu.matmul %4, %31, %cst_16 {dimension_numbers = #tpu.dot_dimension_numbers<[1], [0], [0], [1], [0, 0, 1, 1], [], []>} : vector<2x32xf32>, vector<32x8xf32>, vector<2x8xf32> -> vector<2x8xf32>
    %c1_17 = arith.constant 1 : index
    %c0_18 = arith.constant 0 : index
    %c0_19 = arith.constant 0 : index
    %33 = vector.load %arg6[%c1_17, %c0_18, %c0_19] : memref<5x64x128xf32, #tpu.memory_space<vmem>>, vector<1x32x8xf32>
    %34 = vector.shape_cast %33 : vector<1x32x8xf32> to vector<32x8xf32>
    %cst_20 = arith.constant dense<0.000000e+00> : vector<2x8xf32>
    %35 = tpu.matmul %29, %34, %cst_20 {dimension_numbers = #tpu.dot_dimension_numbers<[1], [0], [0], [1], [0, 0, 1, 1], [], []>} : vector<2x32xf32>, vector<32x8xf32>, vector<2x8xf32> -> vector<2x8xf32>
    %36 = arith.addf %32, %35 : vector<2x8xf32>
    %c0_21 = arith.constant 0 : index
    %c0_22 = arith.constant 0 : index
    %37 = vector.load %arg7[%c0_21, %c0_22] : memref<15x128xf32, #tpu.memory_space<vmem>>, vector<1x8xf32>
    %38 = vector.broadcast %37 : vector<1x8xf32> to vector<2x8xf32>
    %39 = arith.addf %36, %38 : vector<2x8xf32>
    %cst_23 = arith.constant dense<0xFF800000> : vector<2xf32>
    %40 = vector.multi_reduction <maximumf>, %39, %cst_23 [1] : vector<2x8xf32> to vector<2xf32>
    %41 = vector.shape_cast %40 : vector<2xf32> to vector<2x1xf32>
    %42 = vector.broadcast %41 : vector<2x1xf32> to vector<2x8xf32>
    %43 = arith.subf %39, %42 : vector<2x8xf32>
    %44 = math.exp %43 : vector<2x8xf32>
    %cst_24 = arith.constant dense<0.000000e+00> : vector<2xf32>
    %45 = vector.multi_reduction <add>, %44, %cst_24 [1] : vector<2x8xf32> to vector<2xf32>
    %46 = vector.shape_cast %45 : vector<2xf32> to vector<2x1xf32>
    %47 = tpu.reciprocal %46 {approx = true} : vector<2x1xf32> -> vector<2x1xf32>
    %48 = vector.broadcast %47 : vector<2x1xf32> to vector<2x8xf32>
    %49 = arith.mulf %44, %48 : vector<2x8xf32>
    %c0_25 = arith.constant 0 : index
    %c0_26 = arith.constant 0 : index
    %c0_27 = arith.constant 0 : index
    %50 = vector.load %arg4[%c0_25, %c0_26, %c0_27] : memref<8x2x64xf32, #tpu.memory_space<vmem>>, vector<8x2x64xf32>
    %51 = vector.extract_strided_slice %49 {offsets = [0, 0], sizes = [2, 1], strides = [1, 1]} : vector<2x8xf32> to vector<2x1xf32>
    %52 = vector.extract_strided_slice %50 {offsets = [0, 0, 0], sizes = [1, 2, 64], strides = [1, 1, 1]} : vector<8x2x64xf32> to vector<1x2x64xf32>
    %53 = vector.shape_cast %52 : vector<1x2x64xf32> to vector<2x64xf32>
    %54 = vector.broadcast %51 : vector<2x1xf32> to vector<2x64xf32>
    %55 = arith.mulf %54, %53 : vector<2x64xf32>
    %56 = vector.extract_strided_slice %49 {offsets = [0, 1], sizes = [2, 1], strides = [1, 1]} : vector<2x8xf32> to vector<2x1xf32>
    %57 = vector.extract_strided_slice %50 {offsets = [1, 0, 0], sizes = [1, 2, 64], strides = [1, 1, 1]} : vector<8x2x64xf32> to vector<1x2x64xf32>
    %58 = vector.shape_cast %57 : vector<1x2x64xf32> to vector<2x64xf32>
    %59 = vector.broadcast %56 : vector<2x1xf32> to vector<2x64xf32>
    %60 = arith.mulf %59, %58 : vector<2x64xf32>
    %61 = arith.addf %55, %60 : vector<2x64xf32>
    %62 = vector.extract_strided_slice %49 {offsets = [0, 2], sizes = [2, 1], strides = [1, 1]} : vector<2x8xf32> to vector<2x1xf32>
    %63 = vector.extract_strided_slice %50 {offsets = [2, 0, 0], sizes = [1, 2, 64], strides = [1, 1, 1]} : vector<8x2x64xf32> to vector<1x2x64xf32>
    %64 = vector.shape_cast %63 : vector<1x2x64xf32> to vector<2x64xf32>
    %65 = vector.broadcast %62 : vector<2x1xf32> to vector<2x64xf32>
    %66 = arith.mulf %65, %64 : vector<2x64xf32>
    %67 = arith.addf %61, %66 : vector<2x64xf32>
    %68 = vector.extract_strided_slice %49 {offsets = [0, 3], sizes = [2, 1], strides = [1, 1]} : vector<2x8xf32> to vector<2x1xf32>
    %69 = vector.extract_strided_slice %50 {offsets = [3, 0, 0], sizes = [1, 2, 64], strides = [1, 1, 1]} : vector<8x2x64xf32> to vector<1x2x64xf32>
    %70 = vector.shape_cast %69 : vector<1x2x64xf32> to vector<2x64xf32>
    %71 = vector.broadcast %68 : vector<2x1xf32> to vector<2x64xf32>
    %72 = arith.mulf %71, %70 : vector<2x64xf32>
    %73 = arith.addf %67, %72 : vector<2x64xf32>
    %74 = vector.extract_strided_slice %49 {offsets = [0, 4], sizes = [2, 1], strides = [1, 1]} : vector<2x8xf32> to vector<2x1xf32>
    %75 = vector.extract_strided_slice %50 {offsets = [4, 0, 0], sizes = [1, 2, 64], strides = [1, 1, 1]} : vector<8x2x64xf32> to vector<1x2x64xf32>
    %76 = vector.shape_cast %75 : vector<1x2x64xf32> to vector<2x64xf32>
    %77 = vector.broadcast %74 : vector<2x1xf32> to vector<2x64xf32>
    %78 = arith.mulf %77, %76 : vector<2x64xf32>
    %79 = arith.addf %73, %78 : vector<2x64xf32>
    %80 = vector.extract_strided_slice %49 {offsets = [0, 5], sizes = [2, 1], strides = [1, 1]} : vector<2x8xf32> to vector<2x1xf32>
    %81 = vector.extract_strided_slice %50 {offsets = [5, 0, 0], sizes = [1, 2, 64], strides = [1, 1, 1]} : vector<8x2x64xf32> to vector<1x2x64xf32>
    %82 = vector.shape_cast %81 : vector<1x2x64xf32> to vector<2x64xf32>
    %83 = vector.broadcast %80 : vector<2x1xf32> to vector<2x64xf32>
    %84 = arith.mulf %83, %82 : vector<2x64xf32>
    %85 = arith.addf %79, %84 : vector<2x64xf32>
    %86 = vector.extract_strided_slice %49 {offsets = [0, 6], sizes = [2, 1], strides = [1, 1]} : vector<2x8xf32> to vector<2x1xf32>
    %87 = vector.extract_strided_slice %50 {offsets = [6, 0, 0], sizes = [1, 2, 64], strides = [1, 1, 1]} : vector<8x2x64xf32> to vector<1x2x64xf32>
    %88 = vector.shape_cast %87 : vector<1x2x64xf32> to vector<2x64xf32>
    %89 = vector.broadcast %86 : vector<2x1xf32> to vector<2x64xf32>
    %90 = arith.mulf %89, %88 : vector<2x64xf32>
    %91 = arith.addf %85, %90 : vector<2x64xf32>
    %92 = vector.extract_strided_slice %49 {offsets = [0, 7], sizes = [2, 1], strides = [1, 1]} : vector<2x8xf32> to vector<2x1xf32>
    %93 = vector.extract_strided_slice %50 {offsets = [7, 0, 0], sizes = [1, 2, 64], strides = [1, 1, 1]} : vector<8x2x64xf32> to vector<1x2x64xf32>
    %94 = vector.shape_cast %93 : vector<1x2x64xf32> to vector<2x64xf32>
    %95 = vector.broadcast %92 : vector<2x1xf32> to vector<2x64xf32>
    %96 = arith.mulf %95, %94 : vector<2x64xf32>
    %97 = arith.addf %91, %96 : vector<2x64xf32>
    %c2 = arith.constant 2 : index
    %c0_28 = arith.constant 0 : index
    %c0_29 = arith.constant 0 : index
    %98 = vector.load %arg6[%c2, %c0_28, %c0_29] : memref<5x64x128xf32, #tpu.memory_space<vmem>>, vector<1x32x32xf32>
    %99 = vector.shape_cast %98 : vector<1x32x32xf32> to vector<32x32xf32>
    %cst_30 = arith.constant dense<0.000000e+00> : vector<2x32xf32>
    %100 = tpu.matmul %29, %99, %cst_30 {dimension_numbers = #tpu.dot_dimension_numbers<[1], [0], [0], [1], [0, 0, 1, 1], [], []>} : vector<2x32xf32>, vector<32x32xf32>, vector<2x32xf32> -> vector<2x32xf32>
    %c3 = arith.constant 3 : index
    %c0_31 = arith.constant 0 : index
    %c0_32 = arith.constant 0 : index
    %101 = vector.load %arg6[%c3, %c0_31, %c0_32] : memref<5x64x128xf32, #tpu.memory_space<vmem>>, vector<1x64x32xf32>
    %102 = vector.shape_cast %101 : vector<1x64x32xf32> to vector<64x32xf32>
    %cst_33 = arith.constant dense<0.000000e+00> : vector<2x32xf32>
    %103 = tpu.matmul %97, %102, %cst_33 {dimension_numbers = #tpu.dot_dimension_numbers<[1], [0], [0], [1], [0, 0, 1, 1], [], []>} : vector<2x64xf32>, vector<64x32xf32>, vector<2x32xf32> -> vector<2x32xf32>
    %104 = arith.addf %100, %103 : vector<2x32xf32>
    %c1_34 = arith.constant 1 : index
    %c0_35 = arith.constant 0 : index
    %105 = vector.load %arg7[%c1_34, %c0_35] : memref<15x128xf32, #tpu.memory_space<vmem>>, vector<1x32xf32>
    %106 = vector.broadcast %105 : vector<1x32xf32> to vector<2x32xf32>
    %107 = arith.addf %104, %106 : vector<2x32xf32>
    %cst_36 = arith.constant 0.000000e+00 : f32
    %108 = vector.broadcast %cst_36 : f32 to vector<2x32xf32>
    %109 = arith.maximumf %107, %108 : vector<2x32xf32>
    %c0_37 = arith.constant 0 : index
    %c0_38 = arith.constant 0 : index
    %c0_39 = arith.constant 0 : index
    %c0_40 = arith.constant 0 : index
    %110 = vector.load %arg5[%c0_37, %c0_38, %c0_39, %c0_40] : memref<2x6x32x32xf32, #tpu.memory_space<vmem>>, vector<1x1x32x32xf32>
    %111 = vector.shape_cast %110 : vector<1x1x32x32xf32> to vector<32x32xf32>
    %cst_41 = arith.constant dense<0.000000e+00> : vector<2x32xf32>
    %112 = tpu.matmul %109, %111, %cst_41 {dimension_numbers = #tpu.dot_dimension_numbers<[1], [0], [0], [1], [0, 0, 1, 1], [], []>} : vector<2x32xf32>, vector<32x32xf32>, vector<2x32xf32> -> vector<2x32xf32>
    %c2_42 = arith.constant 2 : index
    %c0_43 = arith.constant 0 : index
    %113 = vector.load %arg7[%c2_42, %c0_43] : memref<15x128xf32, #tpu.memory_space<vmem>>, vector<1x32xf32>
    %114 = vector.broadcast %113 : vector<1x32xf32> to vector<2x32xf32>
    %115 = arith.addf %112, %114 : vector<2x32xf32>
    %c0_44 = arith.constant 0 : index
    %c3_45 = arith.constant 3 : index
    %c0_46 = arith.constant 0 : index
    %c0_47 = arith.constant 0 : index
    %116 = vector.load %arg5[%c0_44, %c3_45, %c0_46, %c0_47] : memref<2x6x32x32xf32, #tpu.memory_space<vmem>>, vector<1x1x32x32xf32>
    %117 = vector.shape_cast %116 : vector<1x1x32x32xf32> to vector<32x32xf32>
    %cst_48 = arith.constant dense<0.000000e+00> : vector<2x32xf32>
    %118 = tpu.matmul %4, %117, %cst_48 {dimension_numbers = #tpu.dot_dimension_numbers<[1], [0], [0], [1], [0, 0, 1, 1], [], []>} : vector<2x32xf32>, vector<32x32xf32>, vector<2x32xf32> -> vector<2x32xf32>
    %c5 = arith.constant 5 : index
    %c0_49 = arith.constant 0 : index
    %119 = vector.load %arg7[%c5, %c0_49] : memref<15x128xf32, #tpu.memory_space<vmem>>, vector<1x32xf32>
    %120 = vector.broadcast %119 : vector<1x32xf32> to vector<2x32xf32>
    %121 = arith.addf %118, %120 : vector<2x32xf32>
    %122 = arith.addf %115, %121 : vector<2x32xf32>
    %123 = arith.negf %122 : vector<2x32xf32>
    %124 = math.exp %123 : vector<2x32xf32>
    %cst_50 = arith.constant 1.000000e+00 : f32
    %125 = vector.broadcast %cst_50 : f32 to vector<2x32xf32>
    %126 = arith.addf %125, %124 : vector<2x32xf32>
    %127 = arith.divf %125, %126 : vector<2x32xf32>
    %c0_51 = arith.constant 0 : index
    %c1_52 = arith.constant 1 : index
    %c0_53 = arith.constant 0 : index
    %c0_54 = arith.constant 0 : index
    %128 = vector.load %arg5[%c0_51, %c1_52, %c0_53, %c0_54] : memref<2x6x32x32xf32, #tpu.memory_space<vmem>>, vector<1x1x32x32xf32>
    %129 = vector.shape_cast %128 : vector<1x1x32x32xf32> to vector<32x32xf32>
    %cst_55 = arith.constant dense<0.000000e+00> : vector<2x32xf32>
    %130 = tpu.matmul %109, %129, %cst_55 {dimension_numbers = #tpu.dot_dimension_numbers<[1], [0], [0], [1], [0, 0, 1, 1], [], []>} : vector<2x32xf32>, vector<32x32xf32>, vector<2x32xf32> -> vector<2x32xf32>
    %c3_56 = arith.constant 3 : index
    %c0_57 = arith.constant 0 : index
    %131 = vector.load %arg7[%c3_56, %c0_57] : memref<15x128xf32, #tpu.memory_space<vmem>>, vector<1x32xf32>
    %132 = vector.broadcast %131 : vector<1x32xf32> to vector<2x32xf32>
    %133 = arith.addf %130, %132 : vector<2x32xf32>
    %c0_58 = arith.constant 0 : index
    %c4 = arith.constant 4 : index
    %c0_59 = arith.constant 0 : index
    %c0_60 = arith.constant 0 : index
    %134 = vector.load %arg5[%c0_58, %c4, %c0_59, %c0_60] : memref<2x6x32x32xf32, #tpu.memory_space<vmem>>, vector<1x1x32x32xf32>
    %135 = vector.shape_cast %134 : vector<1x1x32x32xf32> to vector<32x32xf32>
    %cst_61 = arith.constant dense<0.000000e+00> : vector<2x32xf32>
    %136 = tpu.matmul %4, %135, %cst_61 {dimension_numbers = #tpu.dot_dimension_numbers<[1], [0], [0], [1], [0, 0, 1, 1], [], []>} : vector<2x32xf32>, vector<32x32xf32>, vector<2x32xf32> -> vector<2x32xf32>
    %c6 = arith.constant 6 : index
    %c0_62 = arith.constant 0 : index
    %137 = vector.load %arg7[%c6, %c0_62] : memref<15x128xf32, #tpu.memory_space<vmem>>, vector<1x32xf32>
    %138 = vector.broadcast %137 : vector<1x32xf32> to vector<2x32xf32>
    %139 = arith.addf %136, %138 : vector<2x32xf32>
    %140 = arith.addf %133, %139 : vector<2x32xf32>
    %141 = arith.negf %140 : vector<2x32xf32>
    %142 = math.exp %141 : vector<2x32xf32>
    %cst_63 = arith.constant 1.000000e+00 : f32
    %143 = vector.broadcast %cst_63 : f32 to vector<2x32xf32>
    %144 = arith.addf %143, %142 : vector<2x32xf32>
    %145 = arith.divf %143, %144 : vector<2x32xf32>
    %c0_64 = arith.constant 0 : index
    %c2_65 = arith.constant 2 : index
    %c0_66 = arith.constant 0 : index
    %c0_67 = arith.constant 0 : index
    %146 = vector.load %arg5[%c0_64, %c2_65, %c0_66, %c0_67] : memref<2x6x32x32xf32, #tpu.memory_space<vmem>>, vector<1x1x32x32xf32>
    %147 = vector.shape_cast %146 : vector<1x1x32x32xf32> to vector<32x32xf32>
    %cst_68 = arith.constant dense<0.000000e+00> : vector<2x32xf32>
    %148 = tpu.matmul %109, %147, %cst_68 {dimension_numbers = #tpu.dot_dimension_numbers<[1], [0], [0], [1], [0, 0, 1, 1], [], []>} : vector<2x32xf32>, vector<32x32xf32>, vector<2x32xf32> -> vector<2x32xf32>
    %c4_69 = arith.constant 4 : index
    %c0_70 = arith.constant 0 : index
    %149 = vector.load %arg7[%c4_69, %c0_70] : memref<15x128xf32, #tpu.memory_space<vmem>>, vector<1x32xf32>
    %150 = vector.broadcast %149 : vector<1x32xf32> to vector<2x32xf32>
    %151 = arith.addf %148, %150 : vector<2x32xf32>
    %c0_71 = arith.constant 0 : index
    %c5_72 = arith.constant 5 : index
    %c0_73 = arith.constant 0 : index
    %c0_74 = arith.constant 0 : index
    %152 = vector.load %arg5[%c0_71, %c5_72, %c0_73, %c0_74] : memref<2x6x32x32xf32, #tpu.memory_space<vmem>>, vector<1x1x32x32xf32>
    %153 = vector.shape_cast %152 : vector<1x1x32x32xf32> to vector<32x32xf32>
    %cst_75 = arith.constant dense<0.000000e+00> : vector<2x32xf32>
    %154 = tpu.matmul %4, %153, %cst_75 {dimension_numbers = #tpu.dot_dimension_numbers<[1], [0], [0], [1], [0, 0, 1, 1], [], []>} : vector<2x32xf32>, vector<32x32xf32>, vector<2x32xf32> -> vector<2x32xf32>
    %c7 = arith.constant 7 : index
    %c0_76 = arith.constant 0 : index
    %155 = vector.load %arg7[%c7, %c0_76] : memref<15x128xf32, #tpu.memory_space<vmem>>, vector<1x32xf32>
    %156 = vector.broadcast %155 : vector<1x32xf32> to vector<2x32xf32>
    %157 = arith.addf %154, %156 : vector<2x32xf32>
    %158 = arith.mulf %127, %157 : vector<2x32xf32>
    %159 = arith.addf %151, %158 : vector<2x32xf32>
    %160 = math.tanh %159 : vector<2x32xf32>
    %cst_77 = arith.constant 1.000000e+00 : f32
    %161 = vector.broadcast %cst_77 : f32 to vector<2x32xf32>
    %162 = arith.subf %161, %145 : vector<2x32xf32>
    %163 = arith.mulf %162, %160 : vector<2x32xf32>
    %164 = arith.mulf %145, %4 : vector<2x32xf32>
    %165 = arith.addf %163, %164 : vector<2x32xf32>
    %c1_78 = arith.constant 1 : index
    %c0_79 = arith.constant 0 : index
    %c0_80 = arith.constant 0 : index
    %c0_81 = arith.constant 0 : index
    %166 = vector.load %arg5[%c1_78, %c0_79, %c0_80, %c0_81] : memref<2x6x32x32xf32, #tpu.memory_space<vmem>>, vector<1x1x32x32xf32>
    %167 = vector.shape_cast %166 : vector<1x1x32x32xf32> to vector<32x32xf32>
    %cst_82 = arith.constant dense<0.000000e+00> : vector<2x32xf32>
    %168 = tpu.matmul %165, %167, %cst_82 {dimension_numbers = #tpu.dot_dimension_numbers<[1], [0], [0], [1], [0, 0, 1, 1], [], []>} : vector<2x32xf32>, vector<32x32xf32>, vector<2x32xf32> -> vector<2x32xf32>
    %c8 = arith.constant 8 : index
    %c0_83 = arith.constant 0 : index
    %169 = vector.load %arg7[%c8, %c0_83] : memref<15x128xf32, #tpu.memory_space<vmem>>, vector<1x32xf32>
    %170 = vector.broadcast %169 : vector<1x32xf32> to vector<2x32xf32>
    %171 = arith.addf %168, %170 : vector<2x32xf32>
    %c1_84 = arith.constant 1 : index
    %c3_85 = arith.constant 3 : index
    %c0_86 = arith.constant 0 : index
    %c0_87 = arith.constant 0 : index
    %172 = vector.load %arg5[%c1_84, %c3_85, %c0_86, %c0_87] : memref<2x6x32x32xf32, #tpu.memory_space<vmem>>, vector<1x1x32x32xf32>
    %173 = vector.shape_cast %172 : vector<1x1x32x32xf32> to vector<32x32xf32>
    %cst_88 = arith.constant dense<0.000000e+00> : vector<2x32xf32>
    %174 = tpu.matmul %6, %173, %cst_88 {dimension_numbers = #tpu.dot_dimension_numbers<[1], [0], [0], [1], [0, 0, 1, 1], [], []>} : vector<2x32xf32>, vector<32x32xf32>, vector<2x32xf32> -> vector<2x32xf32>
    %c11 = arith.constant 11 : index
    %c0_89 = arith.constant 0 : index
    %175 = vector.load %arg7[%c11, %c0_89] : memref<15x128xf32, #tpu.memory_space<vmem>>, vector<1x32xf32>
    %176 = vector.broadcast %175 : vector<1x32xf32> to vector<2x32xf32>
    %177 = arith.addf %174, %176 : vector<2x32xf32>
    %178 = arith.addf %171, %177 : vector<2x32xf32>
    %179 = arith.negf %178 : vector<2x32xf32>
    %180 = math.exp %179 : vector<2x32xf32>
    %cst_90 = arith.constant 1.000000e+00 : f32
    %181 = vector.broadcast %cst_90 : f32 to vector<2x32xf32>
    %182 = arith.addf %181, %180 : vector<2x32xf32>
    %183 = arith.divf %181, %182 : vector<2x32xf32>
    %c1_91 = arith.constant 1 : index
    %c1_92 = arith.constant 1 : index
    %c0_93 = arith.constant 0 : index
    %c0_94 = arith.constant 0 : index
    %184 = vector.load %arg5[%c1_91, %c1_92, %c0_93, %c0_94] : memref<2x6x32x32xf32, #tpu.memory_space<vmem>>, vector<1x1x32x32xf32>
    %185 = vector.shape_cast %184 : vector<1x1x32x32xf32> to vector<32x32xf32>
    %cst_95 = arith.constant dense<0.000000e+00> : vector<2x32xf32>
    %186 = tpu.matmul %165, %185, %cst_95 {dimension_numbers = #tpu.dot_dimension_numbers<[1], [0], [0], [1], [0, 0, 1, 1], [], []>} : vector<2x32xf32>, vector<32x32xf32>, vector<2x32xf32> -> vector<2x32xf32>
    %c9 = arith.constant 9 : index
    %c0_96 = arith.constant 0 : index
    %187 = vector.load %arg7[%c9, %c0_96] : memref<15x128xf32, #tpu.memory_space<vmem>>, vector<1x32xf32>
    %188 = vector.broadcast %187 : vector<1x32xf32> to vector<2x32xf32>
    %189 = arith.addf %186, %188 : vector<2x32xf32>
    %c1_97 = arith.constant 1 : index
    %c4_98 = arith.constant 4 : index
    %c0_99 = arith.constant 0 : index
    %c0_100 = arith.constant 0 : index
    %190 = vector.load %arg5[%c1_97, %c4_98, %c0_99, %c0_100] : memref<2x6x32x32xf32, #tpu.memory_space<vmem>>, vector<1x1x32x32xf32>
    %191 = vector.shape_cast %190 : vector<1x1x32x32xf32> to vector<32x32xf32>
    %cst_101 = arith.constant dense<0.000000e+00> : vector<2x32xf32>
    %192 = tpu.matmul %6, %191, %cst_101 {dimension_numbers = #tpu.dot_dimension_numbers<[1], [0], [0], [1], [0, 0, 1, 1], [], []>} : vector<2x32xf32>, vector<32x32xf32>, vector<2x32xf32> -> vector<2x32xf32>
    %c12 = arith.constant 12 : index
    %c0_102 = arith.constant 0 : index
    %193 = vector.load %arg7[%c12, %c0_102] : memref<15x128xf32, #tpu.memory_space<vmem>>, vector<1x32xf32>
    %194 = vector.broadcast %193 : vector<1x32xf32> to vector<2x32xf32>
    %195 = arith.addf %192, %194 : vector<2x32xf32>
    %196 = arith.addf %189, %195 : vector<2x32xf32>
    %197 = arith.negf %196 : vector<2x32xf32>
    %198 = math.exp %197 : vector<2x32xf32>
    %cst_103 = arith.constant 1.000000e+00 : f32
    %199 = vector.broadcast %cst_103 : f32 to vector<2x32xf32>
    %200 = arith.addf %199, %198 : vector<2x32xf32>
    %201 = arith.divf %199, %200 : vector<2x32xf32>
    %c1_104 = arith.constant 1 : index
    %c2_105 = arith.constant 2 : index
    %c0_106 = arith.constant 0 : index
    %c0_107 = arith.constant 0 : index
    %202 = vector.load %arg5[%c1_104, %c2_105, %c0_106, %c0_107] : memref<2x6x32x32xf32, #tpu.memory_space<vmem>>, vector<1x1x32x32xf32>
    %203 = vector.shape_cast %202 : vector<1x1x32x32xf32> to vector<32x32xf32>
    %cst_108 = arith.constant dense<0.000000e+00> : vector<2x32xf32>
    %204 = tpu.matmul %165, %203, %cst_108 {dimension_numbers = #tpu.dot_dimension_numbers<[1], [0], [0], [1], [0, 0, 1, 1], [], []>} : vector<2x32xf32>, vector<32x32xf32>, vector<2x32xf32> -> vector<2x32xf32>
    %c10 = arith.constant 10 : index
    %c0_109 = arith.constant 0 : index
    %205 = vector.load %arg7[%c10, %c0_109] : memref<15x128xf32, #tpu.memory_space<vmem>>, vector<1x32xf32>
    %206 = vector.broadcast %205 : vector<1x32xf32> to vector<2x32xf32>
    %207 = arith.addf %204, %206 : vector<2x32xf32>
    %c1_110 = arith.constant 1 : index
    %c5_111 = arith.constant 5 : index
    %c0_112 = arith.constant 0 : index
    %c0_113 = arith.constant 0 : index
    %208 = vector.load %arg5[%c1_110, %c5_111, %c0_112, %c0_113] : memref<2x6x32x32xf32, #tpu.memory_space<vmem>>, vector<1x1x32x32xf32>
    %209 = vector.shape_cast %208 : vector<1x1x32x32xf32> to vector<32x32xf32>
    %cst_114 = arith.constant dense<0.000000e+00> : vector<2x32xf32>
    %210 = tpu.matmul %6, %209, %cst_114 {dimension_numbers = #tpu.dot_dimension_numbers<[1], [0], [0], [1], [0, 0, 1, 1], [], []>} : vector<2x32xf32>, vector<32x32xf32>, vector<2x32xf32> -> vector<2x32xf32>
    %c13 = arith.constant 13 : index
    %c0_115 = arith.constant 0 : index
    %211 = vector.load %arg7[%c13, %c0_115] : memref<15x128xf32, #tpu.memory_space<vmem>>, vector<1x32xf32>
    %212 = vector.broadcast %211 : vector<1x32xf32> to vector<2x32xf32>
    %213 = arith.addf %210, %212 : vector<2x32xf32>
    %214 = arith.mulf %183, %213 : vector<2x32xf32>
    %215 = arith.addf %207, %214 : vector<2x32xf32>
    %216 = math.tanh %215 : vector<2x32xf32>
    %cst_116 = arith.constant 1.000000e+00 : f32
    %217 = vector.broadcast %cst_116 : f32 to vector<2x32xf32>
    %218 = arith.subf %217, %201 : vector<2x32xf32>
    %219 = arith.mulf %218, %216 : vector<2x32xf32>
    %220 = arith.mulf %201, %6 : vector<2x32xf32>
    %221 = arith.addf %219, %220 : vector<2x32xf32>
    %c4_117 = arith.constant 4 : index
    %c0_118 = arith.constant 0 : index
    %c0_119 = arith.constant 0 : index
    %222 = vector.load %arg6[%c4_117, %c0_118, %c0_119] : memref<5x64x128xf32, #tpu.memory_space<vmem>>, vector<1x32x50xf32>
    %223 = vector.shape_cast %222 : vector<1x32x50xf32> to vector<32x50xf32>
    %cst_120 = arith.constant dense<0.000000e+00> : vector<2x50xf32>
    %224 = tpu.matmul %221, %223, %cst_120 {dimension_numbers = #tpu.dot_dimension_numbers<[1], [0], [0], [1], [0, 0, 1, 1], [], []>} : vector<2x32xf32>, vector<32x50xf32>, vector<2x50xf32> -> vector<2x50xf32>
    %c14 = arith.constant 14 : index
    %c0_121 = arith.constant 0 : index
    %225 = vector.load %arg7[%c14, %c0_121] : memref<15x128xf32, #tpu.memory_space<vmem>>, vector<1x50xf32>
    %226 = vector.broadcast %225 : vector<1x50xf32> to vector<2x50xf32>
    %227 = arith.addf %224, %226 : vector<2x50xf32>
    %cst_122 = arith.constant dense<0xFF800000> : vector<2xf32>
    %228 = vector.multi_reduction <maximumf>, %227, %cst_122 [1] : vector<2x50xf32> to vector<2xf32>
    %229 = vector.shape_cast %228 : vector<2xf32> to vector<2x1xf32>
    %230 = vector.broadcast %229 : vector<2x1xf32> to vector<2x50xf32>
    %231 = arith.subf %227, %230 : vector<2x50xf32>
    %232 = math.exp %231 : vector<2x50xf32>
    %cst_123 = arith.constant dense<0.000000e+00> : vector<2xf32>
    %233 = vector.multi_reduction <add>, %232, %cst_123 [1] : vector<2x50xf32> to vector<2xf32>
    %234 = vector.shape_cast %233 : vector<2xf32> to vector<2x1xf32>
    %235 = math.log %234 : vector<2x1xf32>
    %236 = vector.broadcast %235 : vector<2x1xf32> to vector<2x50xf32>
    %237 = arith.subf %231, %236 : vector<2x50xf32>
    %c0_124 = arith.constant 0 : index
    %c0_125 = arith.constant 0 : index
    %c0_126 = arith.constant 0 : index
    %238 = vector.load %arg8[%c0_124, %c0_125, %c0_126] : memref<1x2x50xf32, #tpu.memory_space<vmem>>, vector<1x2x50xf32>
    %239 = vector.shape_cast %238 : vector<1x2x50xf32> to vector<2x50xf32>
    %240 = vector.shape_cast %237 : vector<2x50xf32> to vector<1x2x50xf32>
    tpu.vector_store %arg8[%c0_124, %c0_125, %c0_126], %240 {strides = array<i32>} : memref<1x2x50xf32, #tpu.memory_space<vmem>>, vector<1x2x50xf32>,
    %c0_127 = arith.constant 0 : index
    %c0_128 = arith.constant 0 : index
    %c0_129 = arith.constant 0 : index
    %241 = vector.load %arg10[%c0_127, %c0_128, %c0_129] : memref<1x2x8xf32, #tpu.memory_space<vmem>>, vector<1x2x8xf32>
    %242 = vector.shape_cast %241 : vector<1x2x8xf32> to vector<2x8xf32>
    %243 = vector.shape_cast %49 : vector<2x8xf32> to vector<1x2x8xf32>
    tpu.vector_store %arg10[%c0_127, %c0_128, %c0_129], %243 {strides = array<i32>} : memref<1x2x8xf32, #tpu.memory_space<vmem>>, vector<1x2x8xf32>,
    %c0_130 = arith.constant 0 : index
    %c0_131 = arith.constant 0 : index
    %c0_132 = arith.constant 0 : index
    %244 = vector.load %arg9[%c0_130, %c0_131, %c0_132] : memref<2x2x32xf32, #tpu.memory_space<vmem>>, vector<1x2x32xf32>
    %245 = vector.shape_cast %244 : vector<1x2x32xf32> to vector<2x32xf32>
    %246 = vector.shape_cast %165 : vector<2x32xf32> to vector<1x2x32xf32>
    tpu.vector_store %arg9[%c0_130, %c0_131, %c0_132], %246 {strides = array<i32>} : memref<2x2x32xf32, #tpu.memory_space<vmem>>, vector<1x2x32xf32>,
    %c1_133 = arith.constant 1 : index
    %c0_134 = arith.constant 0 : index
    %c0_135 = arith.constant 0 : index
    %247 = vector.load %arg9[%c1_133, %c0_134, %c0_135] : memref<2x2x32xf32, #tpu.memory_space<vmem>>, vector<1x2x32xf32>
    %248 = vector.shape_cast %247 : vector<1x2x32xf32> to vector<2x32xf32>
    %249 = vector.shape_cast %221 : vector<2x32xf32> to vector<1x2x32xf32>
    tpu.vector_store %arg9[%c1_133, %c0_134, %c0_135], %249 {strides = array<i32>} : memref<2x2x32xf32, #tpu.memory_space<vmem>>, vector<1x2x32xf32>,
    return
  }
  func.func @transform_0(%arg0: i32, %arg1: memref<6x2xi32, #tpu.memory_space<smem>>) -> (i32, i32) {
    %c0_i32 = arith.constant 0 : i32
    %c0_i32_0 = arith.constant 0 : i32
    %c0_i32_1 = arith.constant 0 : i32
    return %c0_i32, %c0_i32_0 : i32, i32
  }
  func.func @transform_1(%arg0: i32, %arg1: memref<6x2xi32, #tpu.memory_space<smem>>) -> (i32, i32, i32) {
    %c0_i32 = arith.constant 0 : i32
    %c0_i32_0 = arith.constant 0 : i32
    %c0_i32_1 = arith.constant 0 : i32
    %c0_i32_2 = arith.constant 0 : i32
    return %c0_i32, %c0_i32_0, %c0_i32_1 : i32, i32, i32
  }
  func.func @transform_2(%arg0: i32, %arg1: memref<6x2xi32, #tpu.memory_space<smem>>) -> (i32, i32, i32) {
    %c0_i32 = arith.constant 0 : i32
    %c0_i32_0 = arith.constant 0 : i32
    %c0_i32_1 = arith.constant 0 : i32
    %c0_i32_2 = arith.constant 0 : i32
    return %c0_i32, %c0_i32_0, %c0_i32_1 : i32, i32, i32
  }
  func.func @transform_3(%arg0: i32, %arg1: memref<6x2xi32, #tpu.memory_space<smem>>) -> (i32, i32, i32, i32) {
    %c0_i32 = arith.constant 0 : i32
    %c0_i32_0 = arith.constant 0 : i32
    %c0_i32_1 = arith.constant 0 : i32
    %c0_i32_2 = arith.constant 0 : i32
    %c0_i32_3 = arith.constant 0 : i32
    return %c0_i32, %c0_i32_0, %c0_i32_1, %c0_i32_2 : i32, i32, i32, i32
  }
  func.func @transform_4(%arg0: i32, %arg1: memref<6x2xi32, #tpu.memory_space<smem>>) -> (i32, i32, i32) {
    %c0_i32 = arith.constant 0 : i32
    %c0_i32_0 = arith.constant 0 : i32
    %c0_i32_1 = arith.constant 0 : i32
    %c0_i32_2 = arith.constant 0 : i32
    return %c0_i32, %c0_i32_0, %c0_i32_1 : i32, i32, i32
  }
  func.func @transform_5(%arg0: i32, %arg1: memref<6x2xi32, #tpu.memory_space<smem>>) -> (i32, i32) {
    %c0_i32 = arith.constant 0 : i32
    %c0_i32_0 = arith.constant 0 : i32
    %c0_i32_1 = arith.constant 0 : i32
    return %c0_i32, %c0_i32_0 : i32, i32
  }
  func.func @transform_6(%arg0: i32, %arg1: memref<6x2xi32, #tpu.memory_space<smem>>) -> (i32, i32, i32) {
    %c0_i32 = arith.constant 0 : i32
    %c0_i32_0 = arith.constant 0 : i32
    %c0_i32_1 = arith.constant 0 : i32
    return %arg0, %c0_i32, %c0_i32_0 : i32, i32, i32
  }
  func.func @transform_7(%arg0: i32, %arg1: memref<6x2xi32, #tpu.memory_space<smem>>) -> (i32, i32, i32) {
    %c0_i32 = arith.constant 0 : i32
    %c0_i32_0 = arith.constant 0 : i32
    %c0_i32_1 = arith.constant 0 : i32
    %c0_i32_2 = arith.constant 0 : i32
    return %c0_i32, %c0_i32_0, %c0_i32_1 : i32, i32, i32
  }
  func.func @transform_8(%arg0: i32, %arg1: memref<6x2xi32, #tpu.memory_space<smem>>) -> (i32, i32, i32) {
    %c0_i32 = arith.constant 0 : i32
    %c0_i32_0 = arith.constant 0 : i32
    %c0_i32_1 = arith.constant 0 : i32
    return %arg0, %c0_i32, %c0_i32_0 : i32, i32, i32
  }
}

</mosaic_0001>

<bundles_post_ra>
// kernel: tpu_custom_call.1
= control target key start
LH: loop header
LB: loop body
LE: loop exit
PB: predicated region body
PF: predicated region fallthrough
CT: control target
= control target key end

     0   :  { %s3453_s0 = inlined_call_operand.vmem [shape: s32[6,2], index: 0, kind: input, shape index: {}]   ;;  %s3454_s1 = inlined_call_operand.vmem [shape: f32[50,32], index: 1, kind: input, shape index: {}]   ;;  %s3455_s2 = inlined_call_operand.vmem [shape: f32[2,2,32], index: 2, kind: input, shape index: {}]   ;;  %s3456_s3 = inlined_call_operand.vmem [shape: f32[8,2,64], index: 3, kind: input, shape index: {}]   ;;  %s3457_s4 = inlined_call_operand.hbm [shape: f32[2,6,32,32], index: 4, kind: input, shape index: {}]   ;;  %s3458_s5 = inlined_call_operand.hbm [shape: f32[5,64,128], index: 5, kind: input, shape index: {}]   ;;  %s3459_s6 = inlined_call_operand.vmem [shape: f32[15,128], index: 6, kind: input, shape index: {}]   ;;  %s3460_s7 = inlined_call_operand.hbm [shape: f32[6,2,50], index: 7, kind: output, shape index: {0}]   ;;  %s3461_s8 = inlined_call_operand.hbm [shape: f32[2,2,32], index: 8, kind: output, shape index: {1}]   ;;  %s3462_s9 = inlined_call_operand.hbm [shape: f32[6,2,8], index: 9, kind: output, shape index: {2}]  }
   0x1   :  { %s15_s11 = sshll.u32 %s3453_s0, 4  ;;  %s16_s11 = int_to_ptr.vmem [resolvable:$true] %s15_s11 }
   0x2   :  { %s2726_s12 = scalar_lea.vmem %s16_s11, 128  ;;  %p2731_p1 = scmp.lt.s32.totalorder %s16_s11, %s16_s11 }
   0x3   :  { %p2727_p0 = scmp.ne.s32.totalorder %s16_s11, %s2726_s12  ;;  %p2732_p2 = scmp.lt.s32.totalorder %s2726_s12, %s2726_s12 }
   0x5   :  { %p2733_p3 = por %p2732_p2, %p2731_p1 }
   0x7   :  { %p2734_p4 = pnand %p2733_p3, %p2727_p0 }
   0x9   :  { %2737 = shalt.err (!%p2734_p4)  }
   0xa   :  { %s2926_s13 = smov [#allocation3]  }
   0xb   :  { %18 = dma.vmem_to_smem %s16_s11, 128, %s2926_s13, [#allocation2] }
   0xc   :  { %2892 = dma.done.wait [#allocation2], 128 }
   0xd   :  { %2893 = vsyncadd [#allocation2], 4294967168 }
   0xe   :  { %20 = sfence }
   0xf   :  { %21 = vsyncpa [#allocation5], 0 }
  0x10   :  { %22 = vsyncpa [#allocation8], 0 }
  0x11   :  { %23 = vsyncpa [#allocation6], 0 }
  0x12   :  { %25 = vsyncpa [#allocation6 + $0x1], 0 }
  0x13   :  { %26 = vsyncpa [#allocation11], 0  ;;  %s3000_s14 = smov 0   ;;  %s3002_s0 = smov 0  }
  0x14   :  { %s3004_s15 = smov 0   ;;  %s3006_s16 = smov 0  }
  0x15 LB: > { %s3019_s17 = sadd.s32 4294967295, %s2924_s16   ;;  %s3467_s18 = sadd.s32 4294967294, %s2924_s16   ;;  %s2924_s16 = sphi %s3006_s16, %s3491_s16   ;;  %s2920_s15 = sphi %s3004_s15, %s3490_s15   ;;  %s2916_s0 = sphi %s3002_s0, %s3489_s0   ;;  %s2912_s14 = sphi %s3000_s14, %s3488_s14  }
  0x16   : > { %s3023_s19 = sadd.s32 1, %s2924_s16   ;;  %s165_s20 = sadd.s32 1, %s2920_s15 }
  0x17   : > { %s162_s21 = ssub.s32 %s2924_s16, %s3023_s19  ;;  %p175_p5 = scmp.ne.s32.totalorder %s2920_s15, %s2916_s0 }
  0x18   : > { %p163_p6 = scmp.eq.s32.totalorder %s162_s21, 0  ;;  %p3463_p7 = scmp.eq.s32.totalorder %s3019_s17, 5 }
  0x19   : > { %p181_p8 = scmp.ne.s32.totalorder %s2916_s0, %s2912_s14  ;;  %p182_p9 = scmp.eq.s32.totalorder %s3467_s18, 5 }
  0x1a   : > { %s3035_s22 = scalar_select %p163_p6, %s2920_s15, %s165_s20  }
  0x1b   : > { %p3039_p10 = por %p3463_p7, %p175_p5  ;;  %p3043_p11 = por %p182_p9, %p181_p8 }
  0x1c   : > { %3468 = sst [smem:[#allocation18_spill]] %s3035_s22  ;;  %p2103_p12 = scmp.ge.s32.totalorder %s2924_s16, 1 }
  0x1d   : > { %s3469_s23 = scalar_select %p3039_p10, 1, 0 }
  0x1e   : > { %s3470_s24 = scalar_select %p3043_p11, 1, 0 }
  0x1f   : > { %p236_p13 = scmp.lt.s32.totalorder %s2924_s16, 7  ;;  %p3464_p1 = scmp.eq.s32.totalorder %s3019_s17, 0 }
  0x20   : > { %s2927_s26 = smov [#allocation4]   ;;  %s2928_s29 = smov [#allocation7]  }
  0x21   : > { %p3051_p2 = pnand %p2103_p12, %p236_p13  ;;  %s257_s27 = sshll.u32 %s2927_s26, 4  ;;  %s258_s27 = int_to_ptr.vmem [resolvable:$true] %s257_s27 }
  0x22   : > { %s270_s30 = sshll.u32 %s2928_s29, 4  ;;  %s2738_s12 = scalar_lea.hbm %s3457_s4, 6144  ;;  %s3063_s30 = int_to_ptr.vmem [resolvable:$true] %s270_s30 }
  0x23   : > { %s3471_s25 = scalar_select %p3051_p2, 1, 0 }
  0x24   : > { %p2617_p3 = pneg %p3051_p2  ;;  %p2739_p5 = scmp.ne.s32.totalorder %s3457_s4, %s2738_s12 }
  0x25   : > { %p2745_p12 = scmp.lt.u32.totalorder %s2738_s12, %s3457_s4 }
  0x26   : > { %p3059_p4 = pnand %p3464_p1, %p2617_p3 }
  0x28   : > { %p2740_p6 = pneg %p3059_p4 }
  0x2a   : > { %p2741_p8 = pnand %p2740_p6, %p2739_p5 }
  0x2c   : > { %p2742_p9 = pneg %p2741_p8 }
  0x2e   : > { %p2747_p13 = pnand %p2745_p12, %p2742_p9 }
  0x30   : > { %2750 = shalt.err (!%p2747_p13)
}
  0x31   : > { %s2751_s26 = scalar_lea.vmem %s258_s27, 6144  ;;  %p2759_p1 = scmp.lt.s32.totalorder %s258_s27, %s258_s27 }
  0x32   : > { %p2752_p3 = scmp.ne.s32.totalorder %s258_s27, %s2751_s26  ;;  %p2760_p11 = scmp.lt.s32.totalorder %s2751_s26, %s2751_s26 }
  0x34   : > { %p2754_p7 = pnand %p2752_p3, %p2740_p6  ;;  %p2761_p10 = por %p2760_p11, %p2759_p1 }
  0x36   : > { %p2755_p0 = pneg %p2754_p7 }
  0x38   : > { %p2762_p2 = pnand %p2761_p10, %p2755_p0 }
  0x3a   : > { %2765 = shalt.err (!%p2762_p2)
}
  0x3b   : > { %s2929_s29 = smov 128   ;;  %s2930_s10 = smov 8  }
  0x3c   : > { %2620 = dma.hbm_to_vmem [thread:$0]  (!%p3059_p4), %s3457_s4, 6144, %s258_s27, [#allocation5], %s2929_s29, %s2929_s29, %s2930_s10  }
  0x3d   : > { %s2766_s20 = scalar_lea.hbm %s3458_s5, 5120 }
  0x3e   : > { %p2767_p7 = scmp.ne.s32.totalorder %s3458_s5, %s2766_s20  ;;  %p2773_p0 = scmp.lt.u32.totalorder %s2766_s20, %s3458_s5 }
  0x40   : > { %p2769_p10 = pnand %p2767_p7, %p2740_p6 }
  0x42   : > { %p2770_p11 = pneg %p2769_p10 }
  0x44   : > { %p2775_p1 = pnand %p2773_p0, %p2770_p11 }
  0x46   : > { %2778 = shalt.err (!%p2775_p1)
}
  0x47   : > { %s2779_s27 = scalar_lea.vmem %s3063_s30, 5120  ;;  %p2787_p9 = scmp.lt.s32.totalorder %s3063_s30, %s3063_s30 }
  0x48   : > { %p2780_p2 = scmp.ne.s32.totalorder %s3063_s30, %s2779_s27  ;;  %p2788_p12 = scmp.lt.s32.totalorder %s2779_s27, %s2779_s27 }
  0x4a   : > { %p2782_p5 = pnand %p2780_p2, %p2740_p6  ;;  %p2789_p13 = por %p2788_p12, %p2787_p9 }
  0x4c   : > { %p2783_p8 = pneg %p2782_p5 }
  0x4e   : > { %p2790_p3 = pnand %p2789_p13, %p2783_p8 }
  0x50   : > { %2793 = shalt.err (!%p2790_p3)
}
  0x51   : > { %2623 = dma.hbm_to_vmem [thread:$0]  (!%p3059_p4), %s3458_s5, 5120, %s3063_s30, [#allocation8], %s2929_s29, %s2929_s29, %s2930_s10  }
  0x52   : > { %p3473_p7 = scmp.ne.s32.totalorder %s3471_s25, 0 }
  0x53   : > { %p3474_p10 = scmp.eq.s32.totalorder (!%p3473_p7), %s3019_s17, 0 }
  0x54   : > { %289 = sbr.rel (%p3473_p7) target bundleno = 2357 (0x935), region = 44 }
  0x5b   : > { %2895 = dma.done.wait (%p3474_p10), [#allocation5], 6144   ;;  %p3475_p6 = pmov %p3474_p10 }
  0x5d   : > { %2897 = vsyncadd (%p3475_p6), [#allocation5], 4294961152  ;;  %p3476_p11 = pmov %p3475_p6 }
  0x5e   : > { %p3477_p0 = pmov %p3475_p6 }
  0x5f   : > { %2899 = dma.done.wait (%p3476_p11), [#allocation8], 5120  }
  0x60   : > { %2901 = vsyncadd (%p3477_p0), [#allocation8], 4294962176  ;;  %s315_s28 = sand.u32 1, %s2916_s0   ;;  %p3478_p4 = scmp.ne.s32.totalorder %s3019_s17, 0 }
  0x61   : > { %s3123_s11 = sshll.u32 %s315_s28, 1  ;;  %v331_v0 = vld [vmem:[%s3455_s2] sm:$0x3] (!%p3478_p4)  ;;  %vm333_vm0 = vcmask (!%p3478_p4), 254976   ;;  %v332_v1 = vld [vmem:[%s3455_s2 + $0x2] sm:$0x3] (!%p3478_p4) }
  0x62   : > { %s317_s25 = scalar_lea.vmem [#allocation9], %s3123_s11  ;;  %s326_s30 = scalar_lea.vmem [#allocation12], %s3123_s11  ;;  %334 = vst.msk [vmem:[#allocation10] sm:$0x3] (!%p3478_p4), %vm333_vm0, %v331_v0  ;;  %335 = vst.msk [vmem:[#allocation10 + $0x2] sm:$0x3] (!%p3478_p4), %vm333_vm0, %v332_v1 }
  0x63   : > { %330 = sbr.rel (%p3478_p4) target bundleno = 106 (0x6a), region = 56 }
  0x6a PF: > { %v357_v2 = vld [vmem:[%s3454_s1] sm:$0xff]  ;;  %v358_v3 = vld [vmem:[%s3454_s1 + $0x8] sm:$0xff]  ;;  %v359_v4 = vld [vmem:[%s3454_s1 + $0x10] sm:$0xff]  ;;  %v339_v5 = vlaneseq  ;;  %v2931_v6 = vmov 0.0|0.0   ;;  %s2112_s29 = sshll.u32 %s3019_s17, 7  ;;  %vm2932_vm1 = vmmov 0  }
  0x6b   : > { %2468 = vmatprep.subr.bf16.mxu0 %v2931_v6  ;;  %v2469_v7 = vpack.c.bf16 %v358_v3, %v357_v2  ;;  %v360_v8 = vld [vmem:[%s3454_s1 + $0x18] sm:$0xff]  ;;  %2477 = vmatprep.subr.bf16.mxu1 %v2931_v6  ;;  %v2933_v9 = vmov 0.0   ;;  %s345_s10 = sld [smem:[#allocation3 + %s2112_s29]]  ;;  %s351_s12 = sadd.s32 1, %s2112_s29  ;;  %v447_v12 = vld [vmem:[#allocation7 + $0x40] sm:$0xff]  ;;  %v448_v13 = vld [vmem:[#allocation7 + $0x48] sm:$0xff] }
  0x6c   : > { %2270 = vmatprep.mubr.msk.f32.mxu0 %vm2932_vm1, %v2933_v9  ;;  %2281 = vmatprep.mubr.msk.f32.mxu1 %vm2932_vm1, %v2933_v9  ;;  %v2472_v10 = vpack.c.bf16 %v360_v8, %v359_v4  ;;  %v340_v11 = vshrl.u32 %v339_v5, 7  ;;  %s352_s13 = sld [smem:[#allocation3 + %s351_s12]]  ;;  %v449_v14 = vld [vmem:[#allocation7 + $0x50] sm:$0xff]  ;;  %v361_v15 = vld [vmem:[%s3454_s1 + $0x20] sm:$0xff]  ;;  %v362_v16 = vld [vmem:[%s3454_s1 + $0x28] sm:$0xff]  ;;  %v2478_v17 = vpack.c.bf16 %v448_v13, %v447_v12  ;;  %v342_v19 = vand.u32 127, %v339_v5 }
  0x6d   : > { %2470 = vmatpush3.bf16.msra.mxu0 %v2469_v7  ;;  %v450_v18 = vld [vmem:[#allocation7 + $0x58] sm:$0xff]  ;;  %v2475_v21 = vpack.c.bf16 %v362_v16, %v361_v15  ;;  %v363_v25 = vld [vmem:[%s3454_s1 + $0x30] sm:$0x3]  ;;  %vm368_vm8 = vcmask 1041408   ;;  %vm364_vm9 = vcmask 408576   ;;  %v442_v27 = vld [vmem:[#allocation7] sm:$0xff] }
  0x6e   : > { %2471 = vmatprep.subr.bf16.mxu0 %v2931_v6  ;;  %2479 = vmatpush3.bf16.msra.mxu1 %v2478_v17  ;;  %v2481_v20 = vpack.c.bf16 %v450_v18, %v449_v14  ;;  %vm343_vm2 = vcmp.eq.s32.totalorder %v340_v11, 0  ;;  %vm350_vm3 = vcmp.eq.s32.totalorder %v340_v11, 1  ;;  %v443_v28 = vld [vmem:[#allocation7 + $0x8] sm:$0xff]  ;;  %vm451_vm10 = vcmask 261120   ;;  %v444_v30 = vld [vmem:[#allocation7 + $0x10] sm:$0xff]  ;;  %v445_v31 = vld [vmem:[#allocation7 + $0x18] sm:$0xff] }
  0x6f   : > { %2480 = vmatprep.subr.bf16.mxu1 %v2931_v6  ;;  %v2484_v29 = vpack.c.bf16 %v443_v28, %v442_v27  ;;  %v2487_v34 = vpack.c.bf16 %v445_v31, %v444_v30  ;;  %v673_v35 = vld [vmem:[#allocation7 + $0x80] sm:$0xff]  ;;  %v674_v36 = vld [vmem:[#allocation7 + $0x88] sm:$0xff]  ;;  %v675_v39 = vld [vmem:[#allocation7 + $0x90] sm:$0xff]  ;;  %vm604_vm11 = vcmask 58368   ;;  %v2934_v57 = vmov 2   ;;  %s2942_s27 = smov [#allocation10]  }
  0x70   : > { %v3176_v37 = vld [vmem:[#allocation10] sm:$0x3]  ;;  %v2502_v38 = vpack.c.bf16 %v674_v36, %v673_v35  ;;  %v676_v40 = vld [vmem:[#allocation7 + $0x98] sm:$0xff]  ;;  %2691 = vset.pattern.permute.xlu0 %v2934_v57  ;;  %v2935_v58 = vmov 0   ;;  %v2936_v62 = vmov 1   ;;  %v2937_v63 = vmov 7  }
  0x71   : > { %2473 = vmatpush3.bf16.msra.mxu0 %v2472_v10  ;;  %v346_v22 = vstv %s345_s10  ;;  %v2505_v41 = vpack.c.bf16 %v676_v40, %v675_v39  ;;  %v2117_v45 = vld [vmem:[%s3459_s6] ss:$0 sm:$0xff]  ;;  %2689 = vset.pattern.permute.xlu1 %v2935_v58  ;;  %v2938_v0 = vmov 3   ;;  %v2939_v1 = vmov 4   ;;  %v678_v2 = vld [vmem:[#allocation7 + $0xc0] sm:$0xff]  ;;  %v679_v3 = vld [vmem:[#allocation7 + $0xc8] sm:$0xff] }
  0x72   : > { %2474 = vmatprep.subr.bf16.mxu0 %v2931_v6  ;;  %vm347_vm4 = vcmp.eq.s32.totalorder %v342_v19, %v346_v22  ;;  %v353_v23 = vstv %s352_s13  ;;  %2482 = vmatpush3.bf16.msra.mxu1 %v2481_v20  ;;  %v2490_v4 = vpack.c.bf16 %v679_v3, %v678_v2  ;;  %v2940_v5 = vmov 5   ;;  %v680_v7 = vld [vmem:[#allocation7 + $0xd0] sm:$0xff]  ;;  %v681_v8 = vld [vmem:[#allocation7 + $0xd8] sm:$0xff]  ;;  %v682_v12 = vld [vmem:[#allocation7 + $0xe0] sm:$0xff]  ;;  %s1977_s18 = sshll.u32 %s2942_s27, 4  ;;  %p3479_p2 = scmp.eq.s32.totalorder %s3019_s17, 5  ;;  %s1978_s18 = int_to_ptr.vmem [resolvable:$true] %s1977_s18 }
  0x73   : > { %vm348_vm5 = vmand %vm343_vm2, %vm347_vm4  ;;  %vm354_vm6 = vcmp.eq.s32.totalorder %v342_v19, %v353_v23  ;;  %2483 = vmatprep.subr.bf16.mxu1 %v2931_v6  ;;  %v2493_v10 = vpack.c.bf16 %v681_v8, %v680_v7  ;;  %v2941_v11 = vmov 6   ;;  %v683_v13 = vld [vmem:[#allocation7 + $0xe8] sm:$0xff]  ;;  %v684_v15 = vld [vmem:[#allocation7 + $0xf0] sm:$0xff]  ;;  %vm686_vm12 = vcmask 523264   ;;  %s2794_s22 = scalar_lea.vmem %s1978_s18, 64  ;;  %p2801_p9 = scmp.lt.s32.totalorder %s1978_s18, %s1978_s18 }
  0x74   : > { %v349_v24 = vsel %vm348_vm5, 1.0, %v2933_v9  ;;  %vm355_vm7 = vmand %vm350_vm3, %vm354_vm6  ;;  %v2496_v14 = vpack.c.bf16 %v683_v13, %v682_v12  ;;  %v685_v16 = vld [vmem:[#allocation7 + $0xf8] sm:$0xff]  ;;  %v837_v18 = vld [vmem:[#allocation4] sm:$0xff]  ;;  %vm1945_vm13 = vcmask 254976   ;;  %vm1930_vm14 = vcmask 402432   ;;  %p2795_p1 = scmp.ne.s32.totalorder %s1978_s18, %s2794_s22  ;;  %p2802_p12 = scmp.lt.s32.totalorder %s2794_s22, %s2794_s22 }
  0x75   : > { %2476 = vmatpush3.bf16.msra.mxu0 %v2475_v21  ;;  %v356_v26 = vsel %vm355_vm7, 1.0, %v349_v24  ;;  %v2499_v17 = vpack.c.bf16 %v685_v16, %v684_v15  ;;  %v838_v19 = vld [vmem:[#allocation4 + $0x8] sm:$0xff]  ;;  %v617_v23 = vld [vmem:[%s3456_s3 + $0x2] sm:$0x3]  ;;  %v621_v39 = vld [vmem:[%s3456_s3 + $0xa] sm:$0x3] }
  0x76   : > { %2268 = vmatprep.subr.mxu0 %v2933_v9  ;;  %v2508_v20 = vpack.c.bf16 %v838_v19, %v837_v18  ;;  %v839_v57 = vld [vmem:[#allocation4 + $0x10] sm:$0xff]  ;;  %v840_v58 = vld [vmem:[#allocation4 + $0x18] sm:$0xff]  ;;  %v1088_v7 = vld [vmem:[#allocation4 + $0x88] sm:$0xff]  ;;  %p2796_p5 = pnand %p2795_p1, %p3479_p2  ;;  %p2803_p13 = por %p2802_p12, %p2801_p9 }
  0x77   : > { %v922_v12 = vld [vmem:[#allocation4 + $0x70] sm:$0xff]  ;;  %v1090_v16 = vld [vmem:[#allocation4 + $0x98] sm:$0xff]  ;;  %v1174_v18 = vld [vmem:[#allocation4 + $0x40] sm:$0xff] }
  0x78   : > { %v1089_v15 = vld [vmem:[#allocation4 + $0x90] sm:$0xff]  ;;  %v1175_v19 = vld [vmem:[#allocation4 + $0x48] sm:$0xff]  ;;  %p2797_p8 = pneg %p2796_p5 }
  0x79   : > { %2269 = vmatpush3.msk.msra.mxu0 %vm368_vm8, %v363_v25  ;;  %v616_v25 = vld [vmem:[%s3456_s3] sm:$0x3] }
  0x7a   : > { %2271 = vmatmul.mubr.msk.f32.vlgmr.msra.gmra.mrb[0].mxu0 %vm364_vm9, %v356_v26  ;;  %2489 = vmatprep.subr.bf16.mxu0 %v2931_v6  ;;  %p2804_p3 = pnand %p2803_p13, %p2797_p8 }
  0x7b   : > { %2311 = vmatprep.mubr.msk.f32.mxu0 %vm2932_vm1, %v2933_v9  ;;  %2491 = vmatpush3.bf16.msra.mxu0 %v2490_v4  ;;  %v921_v4 = vld [vmem:[#allocation4 + $0x68] sm:$0xff] }
  0x7c   : > { %2492 = vmatprep.subr.bf16.mxu0 %v2931_v6 }
  0x7f   : > { %2494 = vmatpush3.bf16.msra.mxu0 %v2493_v10 }
  0x80   : > { %2495 = vmatprep.subr.bf16.mxu0 %v2931_v6 }
  0x83   : > { %2497 = vmatpush3.bf16.msra.mxu0 %v2496_v14  ;;  %v923_v14 = vld [vmem:[#allocation4 + $0x78] sm:$0xff] }
  0x84   : > { %2498 = vmatprep.subr.bf16.mxu0 %v2931_v6 }
  0x87   : > { %2500 = vmatpush3.bf16.msra.mxu0 %v2499_v17  ;;  %v2517_v17 = vpack.c.bf16 %v923_v14, %v922_v12  ;;  %v1424_v12 = vld [vmem:[#allocation4 + $0x120] sm:$0xff]  ;;  %v1425_v14 = vld [vmem:[#allocation4 + $0x128] sm:$0xff] }
  0x88   : > { %2519 = vmatprep.subr.bf16.mxu0 %v2931_v6 }
 0x14d   : > { %v438_v32 = vpop.f32.mrb[0].mxu0 }
 0x14e   : > { %v2272_v33 = vpop.f32.mrb[1].mxu0  ;;  %2282 = vmatmul.mubr.msk.f32.vlgmr.msra.gmra.mrb[0].mxu1 %vm451_vm10, %v438_v32 }
 0x14f   : > { %2485 = vmatpush3.bf16.msra.mxu1 %v2484_v29  ;;  %2292 = vmatprep.mubr.msk.f32.mxu1 %vm2932_vm1, %v2933_v9  ;;  %v618_v29 = vld [vmem:[%s3456_s3 + $0x4] sm:$0x3] }
 0x150   : > { %2486 = vmatprep.subr.bf16.mxu1 %v2931_v6 }
 0x153   : > { %2488 = vmatpush3.bf16.msra.mxu1 %v2487_v34  ;;  %v620_v34 = vld [vmem:[%s3456_s3 + $0x8] sm:$0x3] }
 0x154   : > { %2501 = vmatprep.subr.bf16.mxu1 %v2931_v6 }
 0x156   : > { %2293 = vmatmul.mubr.msk.f32.vlgmr.msra.gmra.mrb[2].mxu1 %vm451_vm10, %v3176_v37 }
 0x157   : > { %2503 = vmatpush3.bf16.msra.mxu1 %v2502_v38  ;;  %2322 = vmatprep.mubr.msk.f32.mxu1 %vm2932_vm1, %v2933_v9 }
 0x158   : > { %2504 = vmatprep.subr.bf16.mxu1 %v2931_v6 }
 0x15b   : > { %2506 = vmatpush3.bf16.msra.mxu1 %v2505_v41  ;;  %v622_v41 = vld [vmem:[%s3456_s3 + $0xc] sm:$0x3] }
 0x15c   : > { %2507 = vmatprep.subr.bf16.mxu1 %v2931_v6 }
 0x15e   : > { %2323 = vmatmul.mubr.msk.f32.vlgmr.msra.gmra.mrb[4].mxu1 %vm451_vm10, %v438_v32  ;;  %v619_v32 = vld [vmem:[%s3456_s3 + $0x6] sm:$0x3] }
 0x15f   : > { %2333 = vmatprep.mubr.msk.f32.mxu1 %vm2932_vm1, %v2933_v9  ;;  %2509 = vmatpush3.bf16.msra.mxu1 %v2508_v20  ;;  %v1254_v20 = vld [vmem:[#allocation4 + $0xa0] sm:$0xff] }
 0x160   : > { %2510 = vmatprep.subr.bf16.mxu1 %v2931_v6 }
 0x221   : > { %v521_v42 = vpop.f32.mrb[0].mxu1 }
 0x222   : > { %v2283_v43 = vpop.f32.mrb[1].mxu1 }
 0x229   : > { %v594_v44 = vpop.f32.mrb[2].mxu1 }
 0x22a   : > { %v595_v46 = vadd.f32 %v594_v44, %v521_v42  ;;  %v2294_v47 = vpop.f32.mrb[3].mxu1 }
 0x22b   : > { %v623_v47 = vld [vmem:[%s3456_s3 + $0xe] sm:$0x3] }
 0x22c   : > { %v603_v48 = vadd.f32 %v2117_v45, %v595_v46 }
 0x22e   : > { %v605_v49 = vsel %vm604_vm11, %v603_v48, -inf }
 0x22f   : > { %606 = vmax.xlane.f32.xlu0 %v605_v49 }
 0x231   : > { %v3192_v50 = vpop.f32.mrb[4].mxu1 }
 0x232   : > { %v2324_v51 = vpop.f32.mrb[5].mxu1 }
 0x2bc   : > { %v607_v52 = vpop.xlane.xlu0 %606 }
 0x2bd   : > { %v608_v53 = vsub.f32 %v603_v48, %v607_v52 }
 0x2bf   : > { %v609_v54 = vmul.f32 1.442695, %v608_v53 }
 0x2c1   : > { %2698 = vpow2.f32 %v609_v54  ;;  %v1007_v54 = vld [vmem:[#allocation4 + $0x20] sm:$0xff] }
 0x2cb   : > { %v2699_v55 = vpop.eup %2698 }
 0x2cc   : > { %v611_v56 = vsel %vm604_vm11, %v2699_v55, 0.0 }
 0x2cd   : > { %612 = vadd.xlane.f32.xlu0 %v611_v56 }
 0x35a   : > { %v613_v59 = vpop.xlane.xlu0 %612 }
 0x35b   : > { %2700 = vrcp.f32 %v613_v59  ;;  %v2511_v59 = vpack.c.bf16 %v840_v58, %v839_v57 }
 0x35d   : > { %2512 = vmatpush3.bf16.msra.mxu1 %v2511_v59 }
 0x35e   : > { %2513 = vmatprep.subr.bf16.mxu1 %v2931_v6 }
 0x365   : > { %v2701_v60 = vpop.eup %2700 }
 0x366   : > { %v615_v61 = vmul.f32 %v2701_v60, %v2699_v55  ;;  %v1008_v55 = vld [vmem:[#allocation4 + $0x28] sm:$0xff]  ;;  %v1009_v60 = vld [vmem:[#allocation4 + $0x30] sm:$0xff] }
 0x367   : > { %v2520_v56 = vpack.c.bf16 %v1008_v55, %v1007_v54 }
 0x368   : > { %1944 = vst.msk [vmem:[%s326_s30] sm:$0x3] %vm604_vm11, %v615_v61  ;;  %637 = vperm.xlu0 %2691, %v615_v61   ;;  %626 = vperm.xlu1 %2689, %v615_v61  }
 0x36c   : > { %2690 = vset.pattern.permute.xlu1 %v2936_v62  ;;  %2697 = vset.pattern.permute.xlu0 %v2937_v63 }
 0x36d   : > { %631 = vperm.xlu1 %2690, %v615_v61  }
 0x371   : > { %2692 = vset.pattern.permute.xlu1 %v2938_v0  ;;  %v2120_v0 = vld [vmem:[%s3459_s6 + $0x1] ss:$0 sm:$0xff] }
 0x372   : > { %643 = vperm.xlu1 %2692, %v615_v61  }
 0x376   : > { %2693 = vset.pattern.permute.xlu1 %v2939_v1  ;;  %v920_v1 = vld [vmem:[#allocation4 + $0x60] sm:$0xff] }
 0x377   : > { %649 = vperm.xlu1 %2693, %v615_v61   ;;  %v2514_v10 = vpack.c.bf16 %v921_v4, %v920_v1  ;;  %v2133_v1 = vld [vmem:[%s3459_s6 + $0x7] ss:$0 sm:$0xff]  ;;  %v2131_v4 = vld [vmem:[%s3459_s6 + $0x4] ss:$0 sm:$0xff] }
 0x37b   : > { %2694 = vset.pattern.permute.xlu1 %v2940_v5  ;;  %v1087_v5 = vld [vmem:[#allocation4 + $0x80] sm:$0xff] }
 0x37c   : > { %655 = vperm.xlu1 %2694, %v615_v61  }
 0x380   : > { %2695 = vset.pattern.permute.xlu1 %v2941_v11  ;;  %v2526_v11 = vpack.c.bf16 %v1088_v7, %v1087_v5 }
 0x381   : > { %661 = vperm.xlu1 %2695, %v615_v61  }
 0x385   : > { %2696 = vset.pattern.permute.xlu1 %v2937_v63 }
 0x386   : > { %667 = vperm.xlu1 %2696, %v615_v61   ;;  %v1010_v61 = vld [vmem:[#allocation4 + $0x38] sm:$0xff] }
 0x387   : > { %v2523_v62 = vpack.c.bf16 %v1010_v61, %v1009_v60 }
 0x3e7   : > { %v627_v21 = vpop.permute.xlu1 %626  ;;  %v638_v30 = vpop.permute.xlu0 %637 }
 0x3e8   : > { %v629_v27 = vmul.f32 %v627_v21, %v616_v25  ;;  %v640_v33 = vmul.f32 %v638_v30, %v618_v29  ;;  %v1255_v21 = vld [vmem:[#allocation4 + $0xa8] sm:$0xff]  ;;  %v1341_v30 = vld [vmem:[#allocation4 + $0xc0] sm:$0xff] }
 0x3e9   : > { %v2538_v25 = vpack.c.bf16 %v1255_v21, %v1254_v20  ;;  %v1426_v21 = vld [vmem:[#allocation4 + $0x130] sm:$0xff] }
 0x3ec   : > { %v632_v22 = vpop.permute.xlu1 %631 }
 0x3ed   : > { %v634_v26 = vmul.f32 %v632_v22, %v617_v23  ;;  %v2532_v22 = vpack.c.bf16 %v1175_v19, %v1174_v18  ;;  %v1176_v23 = vld [vmem:[#allocation4 + $0x50] sm:$0xff]  ;;  %v2550_v19 = vpack.c.bf16 %v1425_v14, %v1424_v12 }
 0x3ef   : > { %v635_v31 = vadd.f32 %v634_v26, %v629_v27  ;;  %v1256_v26 = vld [vmem:[#allocation4 + $0xb0] sm:$0xff]  ;;  %v1257_v27 = vld [vmem:[#allocation4 + $0xb8] sm:$0xff] }
 0x3f0   : > { %v2541_v29 = vpack.c.bf16 %v1257_v27, %v1256_v26 }
 0x3f1   : > { %v644_v24 = vpop.permute.xlu1 %643  ;;  %v641_v36 = vadd.f32 %v640_v33, %v635_v31  ;;  %v1342_v31 = vld [vmem:[#allocation4 + $0xc8] sm:$0xff] }
 0x3f2   : > { %v646_v38 = vmul.f32 %v644_v24, %v619_v32  ;;  %v1177_v24 = vld [vmem:[#allocation4 + $0x58] sm:$0xff]  ;;  %v1514_v32 = vld [vmem:[#allocation4 + $0xe0] sm:$0xff]  ;;  %v2544_v33 = vpack.c.bf16 %v1342_v31, %v1341_v30  ;;  %v1762_v30 = vld [vmem:[#allocation4 + $0x168] sm:$0xff] }
 0x3f3   : > { %v3297_v31 = vld [vmem:[#allocation10 + $0x2] sm:$0x3] }
 0x3f4   : > { %v647_v42 = vadd.f32 %v646_v38, %v641_v36  ;;  %v1344_v36 = vld [vmem:[#allocation4 + $0xd8] sm:$0xff] }
 0x3f6   : > { %v650_v28 = vpop.permute.xlu1 %649 }
 0x3f7   : > { %v652_v40 = vmul.f32 %v650_v28, %v620_v34  ;;  %v2535_v28 = vpack.c.bf16 %v1177_v24, %v1176_v23  ;;  %v1515_v34 = vld [vmem:[#allocation4 + $0xe8] sm:$0xff]  ;;  %v1427_v23 = vld [vmem:[#allocation4 + $0x138] sm:$0xff]  ;;  %v1596_v24 = vld [vmem:[#allocation4 + $0x150] sm:$0xff] }
 0x3f8   : > { %v2556_v38 = vpack.c.bf16 %v1515_v34, %v1514_v32  ;;  %v2553_v26 = vpack.c.bf16 %v1427_v23, %v1426_v21  ;;  %v1684_v34 = vld [vmem:[#allocation4 + $0x118] sm:$0xff] }
 0x3f9   : > { %v653_v45 = vadd.f32 %v652_v40, %v647_v42  ;;  %v1517_v40 = vld [vmem:[#allocation4 + $0xf8] sm:$0xff] }
 0x3fb   : > { %v656_v35 = vpop.permute.xlu1 %655 }
 0x3fc   : > { %v658_v43 = vmul.f32 %v656_v35, %v621_v39  ;;  %v1343_v35 = vld [vmem:[#allocation4 + $0xd0] sm:$0xff] }
 0x3fd   : > { %v1516_v39 = vld [vmem:[#allocation4 + $0xf0] sm:$0xff] }
 0x3fe   : > { %v659_v48 = vadd.f32 %v658_v43, %v653_v45  ;;  %v2559_v42 = vpack.c.bf16 %v1517_v40, %v1516_v39  ;;  %v2121_v43 = vld [vmem:[%s3459_s6 + $0x2] ss:$0 sm:$0xff] }
 0x400   : > { %v662_v44 = vpop.permute.xlu1 %661 }
 0x401   : > { %v664_v46 = vmul.f32 %v662_v44, %v622_v41  ;;  %v2547_v41 = vpack.c.bf16 %v1344_v36, %v1343_v35  ;;  %v2123_v44 = vld [vmem:[%s3459_s6 + $0x5] ss:$0 sm:$0xff]  ;;  %v1763_v36 = vld [vmem:[#allocation4 + $0x170] sm:$0xff] }
 0x402   : > { %v2585_v45 = vadd.f32 %v2123_v44, %v2121_v43  ;;  %v1850_v43 = vld [vmem:[#allocation7 + $0x110] sm:$0xff] }
 0x403   : > { %v665_v51 = vadd.f32 %v664_v46, %v659_v48  ;;  %v2126_v46 = vld [vmem:[%s3459_s6 + $0x3] ss:$0 sm:$0xff] }
 0x405   : > { %v668_v49 = vpop.permute.xlu1 %667 }
 0x406   : > { %v670_v52 = vmul.f32 %v668_v49, %v623_v47  ;;  %v2128_v47 = vld [vmem:[%s3459_s6 + $0x6] ss:$0 sm:$0xff] }
 0x408   : > { %v671_v53 = vadd.f32 %v670_v52, %v665_v51  ;;  %v2587_v51 = vadd.f32 %v2128_v47, %v2126_v46  ;;  %v2135_v47 = vld [vmem:[%s3459_s6 + $0x8] ss:$0 sm:$0xff] }
 0x40a   : > { %2312 = vmatmul.mubr.msk.f32.vlgmr.msra.gmra.mrb[2].mxu0 %vm686_vm12, %v671_v53 }
 0x40b   : > { %2355 = vmatprep.mubr.msk.f32.mxu0 %vm2932_vm1, %v2933_v9  ;;  %2521 = vmatpush3.bf16.msra.mxu0 %v2520_v56 }
 0x40c   : > { %2522 = vmatprep.subr.bf16.mxu0 %v2931_v6 }
 0x40f   : > { %2524 = vmatpush3.bf16.msra.mxu0 %v2523_v62 }
 0x410   : > { %2525 = vmatprep.subr.bf16.mxu0 %v2931_v6 }
 0x4dd   : > { %v756_v63 = vpop.f32.mrb[2].mxu0 }
 0x4de   : > { %v827_v2 = vadd.f32 %v3192_v50, %v756_v63  ;;  %v2313_v3 = vpop.f32.mrb[3].mxu0  ;;  %v2529_v50 = vpack.c.bf16 %v1090_v16, %v1089_v15  ;;  %v1594_v15 = vld [vmem:[#allocation4 + $0x140] sm:$0xff]  ;;  %v1595_v16 = vld [vmem:[#allocation4 + $0x148] sm:$0xff] }
 0x4df   : > { %v2562_v20 = vpack.c.bf16 %v1595_v16, %v1594_v15 }
 0x4e0   : > { %v835_v8 = vadd.f32 %v2120_v0, %v827_v2 }
 0x4e2   : > { %v836_v13 = vmax.f32 %v835_v8, 0.0 }
 0x4e4   : > { %2334 = vmatmul.mubr.msk.f32.vlgmr.msra.gmra.mrb[6].mxu1 %vm451_vm10, %v836_v13  ;;  %2356 = vmatmul.mubr.msk.f32.vlgmr.msra.gmra.mrb[4].mxu0 %vm451_vm10, %v836_v13 }
 0x4e5   : > { %2515 = vmatpush3.bf16.msra.mxu1 %v2514_v10  ;;  %2527 = vmatpush3.bf16.msra.mxu0 %v2526_v11 }
 0x4e6   : > { %2516 = vmatprep.subr.bf16.mxu1 %v2931_v6  ;;  %2528 = vmatprep.subr.bf16.mxu0 %v2931_v6 }
 0x4e7   : > { %2344 = vmatprep.mubr.msk.f32.mxu1 %vm2932_vm1, %v2933_v9  ;;  %2366 = vmatprep.mubr.msk.f32.mxu0 %vm2932_vm1, %v2933_v9 }
 0x4e9   : > { %2518 = vmatpush3.bf16.msra.mxu1 %v2517_v17  ;;  %2530 = vmatpush3.bf16.msra.mxu0 %v2529_v50 }
 0x4ea   : > { %2531 = vmatprep.subr.bf16.mxu1 %v2931_v6  ;;  %2537 = vmatprep.subr.bf16.mxu0 %v2931_v6 }
 0x4ec   : > { %2345 = vmatmul.mubr.msk.f32.vlgmr.msra.gmra.mrb[6].mxu1 %vm451_vm10, %v3176_v37  ;;  %2367 = vmatmul.mubr.msk.f32.vlgmr.msra.gmra.mrb[4].mxu0 %vm451_vm10, %v3176_v37 }
 0x4ed   : > { %2533 = vmatpush3.bf16.msra.mxu1 %v2532_v22  ;;  %2377 = vmatprep.mubr.msk.f32.mxu1 %vm2932_vm1, %v2933_v9 }
 0x4ee   : > { %2534 = vmatprep.subr.bf16.mxu1 %v2931_v6  ;;  %2539 = vmatpush3.bf16.msra.mxu0 %v2538_v25  ;;  %v1597_v25 = vld [vmem:[#allocation4 + $0x158] sm:$0xff] }
 0x4ef   : > { %2540 = vmatprep.subr.bf16.mxu0 %v2931_v6  ;;  %2388 = vmatprep.mubr.msk.f32.mxu0 %vm2932_vm1, %v2933_v9  ;;  %v2565_v27 = vpack.c.bf16 %v1597_v25, %v1596_v24 }
 0x4f1   : > { %2536 = vmatpush3.bf16.msra.mxu1 %v2535_v28  ;;  %v1682_v28 = vld [vmem:[#allocation4 + $0x108] sm:$0xff] }
 0x4f2   : > { %2542 = vmatpush3.bf16.msra.mxu0 %v2541_v29  ;;  %2543 = vmatprep.subr.bf16.mxu1 %v2931_v6  ;;  %v1761_v29 = vld [vmem:[#allocation4 + $0x160] sm:$0xff] }
 0x4f3   : > { %2555 = vmatprep.subr.bf16.mxu0 %v2931_v6  ;;  %v2574_v35 = vpack.c.bf16 %v1762_v30, %v1761_v29 }
 0x4f4   : > { %2378 = vmatmul.mubr.msk.f32.vlgmr.msra.gmra.mrb[8].mxu1 %vm451_vm10, %v836_v13 }
 0x4f5   : > { %2389 = vmatmul.mubr.msk.f32.vlgmr.msra.gmra.mrb[6].mxu0 %vm451_vm10, %v3176_v37  ;;  %2399 = vmatprep.mubr.msk.f32.mxu1 %vm2932_vm1, %v2933_v9 }
 0x4f6   : > { %2421 = vmatprep.mubr.msk.f32.mxu0 %vm2932_vm1, %v2933_v9  ;;  %2545 = vmatpush3.bf16.msra.mxu1 %v2544_v33  ;;  %v1683_v33 = vld [vmem:[#allocation4 + $0x110] sm:$0xff] }
 0x4f7   : > { %2557 = vmatpush3.bf16.msra.mxu0 %v2556_v38  ;;  %2546 = vmatprep.subr.bf16.mxu1 %v2931_v6  ;;  %v1764_v38 = vld [vmem:[#allocation4 + $0x178] sm:$0xff]  ;;  %v2571_v39 = vpack.c.bf16 %v1684_v34, %v1683_v33 }
 0x4f8   : > { %2558 = vmatprep.subr.bf16.mxu0 %v2931_v6  ;;  %v2577_v40 = vpack.c.bf16 %v1764_v38, %v1763_v36 }
 0x4fa   : > { %2548 = vmatpush3.bf16.msra.mxu1 %v2547_v41  ;;  %v1848_v41 = vld [vmem:[#allocation7 + $0x100] sm:$0xff] }
 0x4fb   : > { %2560 = vmatpush3.bf16.msra.mxu0 %v2559_v42  ;;  %2549 = vmatprep.subr.bf16.mxu1 %v2931_v6  ;;  %v1849_v42 = vld [vmem:[#allocation7 + $0x108] sm:$0xff] }
 0x4fc   : > { %2561 = vmatprep.subr.bf16.mxu0 %v2931_v6  ;;  %v2580_v44 = vpack.c.bf16 %v1849_v42, %v1848_v41 }
 0x5bf   : > { %v995_v48 = vpop.f32.mrb[6].mxu1  ;;  %v1162_v49 = vpop.f32.mrb[4].mxu0 }
 0x5c0   : > { %v2586_v52 = vadd.f32 %v2585_v45, %v995_v48  ;;  %v2346_v53 = vpop.f32.mrb[7].mxu1  ;;  %v2368_v54 = vpop.f32.mrb[5].mxu0  ;;  %v2588_v56 = vadd.f32 %v2587_v51, %v1162_v49  ;;  %v1851_v45 = vld [vmem:[#allocation7 + $0x118] sm:$0xff]  ;;  %v2137_v48 = vld [vmem:[%s3459_s6 + $0xb] ss:$0 sm:$0xff] }
 0x5c1   : > { %v2583_v46 = vpack.c.bf16 %v1851_v45, %v1850_v43  ;;  %v2589_v49 = vadd.f32 %v2137_v48, %v2135_v47  ;;  %v2142_v51 = vld [vmem:[%s3459_s6 + $0xc] ss:$0 sm:$0xff] }
 0x5c2   : > { %v2125_v55 = vmul.f32 -1.442695, %v2586_v52  ;;  %v2130_v57 = vmul.f32 -1.442695, %v2588_v56 }
 0x5c4   : > { %2702 = vpow2.f32 %v2125_v55 }
 0x5c5   : > { %2704 = vpow2.f32 %v2130_v57 }
 0x5c7   : > { %v1249_v58 = vpop.f32.mrb[8].mxu1 }
 0x5c8   : > { %v2379_v59 = vpop.f32.mrb[9].mxu1  ;;  %v1329_v60 = vpop.f32.mrb[6].mxu0  ;;  %v1250_v7 = vadd.f32 %v2131_v4, %v1249_v58 }
 0x5c9   : > { %v2390_v61 = vpop.f32.mrb[7].mxu0  ;;  %v1330_v3 = vadd.f32 %v2133_v1, %v1329_v60 }
 0x5ce   : > { %v2703_v62 = vpop.eup %2702 }
 0x5cf   : > { %v1003_v63 = vadd.f32 1.0, %v2703_v62  ;;  %v2705_v0 = vpop.eup %2704 }
 0x5d0   : > { %v1170_v2 = vadd.f32 1.0, %v2705_v0 }
 0x5d1   : > { %2706 = vrcp.f32 %v1003_v63 }
 0x5d2   : > { %2708 = vrcp.f32 %v1170_v2 }
 0x5db   : > { %v2707_v5 = vpop.eup %2706 }
 0x5dc   : > { %v1333_v8 = vmul.f32 %v2707_v5, %v1330_v3  ;;  %v2709_v11 = vpop.eup %2708  ;;  %v2147_v3 = vld [vmem:[%s3459_s6 + $0xd] ss:$0 sm:$0xff] }
 0x5dd   : > { %v1336_v13 = vsub.f32 1.0, %v2709_v11  ;;  %v1338_v18 = vmul.f32 %v2709_v11, %v3176_v37  ;;  %v1681_v37 = vld [vmem:[#allocation4 + $0x100] sm:$0xff] }
 0x5de   : > { %v1334_v10 = vadd.f32 %v1333_v8, %v1250_v7  ;;  %v2568_v32 = vpack.c.bf16 %v1682_v28, %v1681_v37  ;;  %v2145_v7 = vld [vmem:[%s3459_s6 + $0xa] ss:$0 sm:$0xff] }
 0x5e0   : > { %2710 = vtanh.f32 %v1334_v10 }
 0x5ea   : > { %v2711_v17 = vpop.eup %2710 }
 0x5eb   : > { %v1337_v50 = vmul.f32 %v2711_v17, %v1336_v13 }
 0x5ed   : > { %v1339_v22 = vadd.f32 %v1338_v18, %v1337_v50  ;;  %v2149_v18 = vld [vmem:[%s3459_s6 + $0xe] ss:$0 sm:$0xff] }
 0x5ef   : > { %2400 = vmatmul.mubr.msk.f32.vlgmr.msra.gmra.mrb[10].mxu1 %vm451_vm10, %v1339_v22  ;;  %2422 = vmatmul.mubr.msk.f32.vlgmr.msra.gmra.mrb[8].mxu0 %vm451_vm10, %v1339_v22  ;;  %1946 = vst.msk [vmem:[#allocation10] sm:$0x3] %vm1945_vm13, %v1339_v22 }
 0x5f0   : > { %2551 = vmatpush3.bf16.msra.mxu1 %v2550_v19  ;;  %2563 = vmatpush3.bf16.msra.mxu0 %v2562_v20 }
 0x5f1   : > { %2552 = vmatprep.subr.bf16.mxu1 %v2931_v6  ;;  %2564 = vmatprep.subr.bf16.mxu0 %v2931_v6 }
 0x5f2   : > { %2410 = vmatprep.mubr.msk.f32.mxu1 %vm2932_vm1, %v2933_v9  ;;  %2432 = vmatprep.mubr.msk.f32.mxu0 %vm2932_vm1, %v2933_v9 }
 0x5f4   : > { %2554 = vmatpush3.bf16.msra.mxu1 %v2553_v26  ;;  %2566 = vmatpush3.bf16.msra.mxu0 %v2565_v27 }
 0x5f5   : > { %2567 = vmatprep.subr.bf16.mxu1 %v2931_v6  ;;  %2573 = vmatprep.subr.bf16.mxu0 %v2931_v6 }
 0x5f7   : > { %2411 = vmatmul.mubr.msk.f32.vlgmr.msra.gmra.mrb[10].mxu1 %vm451_vm10, %v3297_v31  ;;  %2433 = vmatmul.mubr.msk.f32.vlgmr.msra.gmra.mrb[8].mxu0 %vm451_vm10, %v3297_v31 }
 0x5f8   : > { %2569 = vmatpush3.bf16.msra.mxu1 %v2568_v32  ;;  %2443 = vmatprep.mubr.msk.f32.mxu1 %vm2932_vm1, %v2933_v9 }
 0x5f9   : > { %2570 = vmatprep.subr.bf16.mxu1 %v2931_v6  ;;  %2575 = vmatpush3.bf16.msra.mxu0 %v2574_v35 }
 0x5fa   : > { %2576 = vmatprep.subr.bf16.mxu0 %v2931_v6  ;;  %2454 = vmatprep.mubr.msk.f32.mxu0 %vm2932_vm1, %v2933_v9 }
 0x5fc   : > { %2572 = vmatpush3.bf16.msra.mxu1 %v2571_v39 }
 0x5fd   : > { %2578 = vmatpush3.bf16.msra.mxu0 %v2577_v40  ;;  %2579 = vmatprep.subr.bf16.mxu1 %v2931_v6 }
 0x5ff   : > { %2444 = vmatmul.mubr.msk.f32.vlgmr.msra.gmra.mrb[12].mxu1 %vm451_vm10, %v1339_v22 }
 0x600   : > { %2455 = vmatmul.mubr.msk.f32.vlgmr.msra.gmra.mrb[10].mxu0 %vm451_vm10, %v3297_v31  ;;  %2465 = vmatprep.mubr.msk.f32.mxu1 %vm2932_vm1, %v2933_v9  ;;  %v2140_v9 = vld [vmem:[%s3459_s6 + $0x9] ss:$0 sm:$0xff] }
 0x601   : > { %2581 = vmatpush3.bf16.msra.mxu1 %v2580_v44  ;;  %v2591_v53 = vadd.f32 %v2142_v51, %v2140_v9 }
 0x602   : > { %2582 = vmatprep.subr.bf16.mxu1 %v2931_v6 }
 0x605   : > { %2584 = vmatpush3.bf16.msra.mxu1 %v2583_v46 }
 0x6ca   : > { %v1502_v52 = vpop.f32.mrb[10].mxu1  ;;  %v1669_v6 = vpop.f32.mrb[8].mxu0 }
 0x6cb   : > { %v2590_v54 = vadd.f32 %v2589_v49, %v1502_v52  ;;  %v2412_v55 = vpop.f32.mrb[11].mxu1  ;;  %v2434_v56 = vpop.f32.mrb[9].mxu0  ;;  %v2592_v58 = vadd.f32 %v2591_v53, %v1669_v6 }
 0x6cd   : > { %v2139_v57 = vmul.f32 -1.442695, %v2590_v54  ;;  %v2144_v59 = vmul.f32 -1.442695, %v2592_v58 }
 0x6cf   : > { %2712 = vpow2.f32 %v2139_v57 }
 0x6d0   : > { %2714 = vpow2.f32 %v2144_v59 }
 0x6d2   : > { %v1756_v60 = vpop.f32.mrb[12].mxu1 }
 0x6d3   : > { %v2445_v61 = vpop.f32.mrb[13].mxu1  ;;  %v1836_v62 = vpop.f32.mrb[10].mxu0  ;;  %v1757_v10 = vadd.f32 %v2145_v7, %v1756_v60 }
 0x6d4   : > { %v2456_v63 = vpop.f32.mrb[11].mxu0  ;;  %v1837_v5 = vadd.f32 %v2147_v3, %v1836_v62 }
 0x6d9   : > { %v2713_v0 = vpop.eup %2712 }
 0x6da   : > { %v1510_v1 = vadd.f32 1.0, %v2713_v0  ;;  %v2715_v2 = vpop.eup %2714 }
 0x6db   : > { %v1677_v4 = vadd.f32 1.0, %v2715_v2 }
 0x6dc   : > { %2716 = vrcp.f32 %v1510_v1 }
 0x6dd   : > { %2718 = vrcp.f32 %v1677_v4 }
 0x6e6   : > { %v2717_v8 = vpop.eup %2716 }
 0x6e7   : > { %v1840_v11 = vmul.f32 %v2717_v8, %v1837_v5  ;;  %v2719_v13 = vpop.eup %2718 }
 0x6e8   : > { %v1843_v14 = vsub.f32 1.0, %v2719_v13  ;;  %v1845_v17 = vmul.f32 %v2719_v13, %v3297_v31 }
 0x6e9   : > { %v1841_v12 = vadd.f32 %v1840_v11, %v1757_v10 }
 0x6eb   : > { %2720 = vtanh.f32 %v1841_v12 }
 0x6f5   : > { %v2721_v15 = vpop.eup %2720 }
 0x6f6   : > { %v1844_v16 = vmul.f32 %v2721_v15, %v1843_v14 }
 0x6f8   : > { %v1846_v50 = vadd.f32 %v1845_v17, %v1844_v16 }
 0x6fa   : > { %2466 = vmatmul.mubr.msk.f32.vlgmr.msra.gmra.mrb[14].mxu1 %vm451_vm10, %v1846_v50  ;;  %1947 = vst.msk [vmem:[#allocation10 + $0x2] sm:$0x3] %vm1945_vm13, %v1846_v50 }
 0x7cd   : > { %v1926_v19 = vpop.f32.mrb[14].mxu1 }
 0x7ce   : > { %v1927_v20 = vadd.f32 %v2149_v18, %v1926_v19  ;;  %v2467_v21 = vpop.f32.mrb[15].mxu1 }
 0x7d0   : > { %v1931_v22 = vsel %vm1930_vm14, %v1927_v20, -inf }
 0x7d1   : > { %1932 = vmax.xlane.f32.xlu1 %v1931_v22 }
 0x85e   : > { %v1933_v23 = vpop.xlane.xlu1 %1932 }
 0x85f   : > { %v1934_v24 = vsub.f32 %v1927_v20, %v1933_v23 }
 0x861   : > { %v1935_v25 = vmul.f32 1.442695, %v1934_v24 }
 0x863   : > { %2722 = vpow2.f32 %v1935_v25 }
 0x86d   : > { %v2723_v26 = vpop.eup %2722 }
 0x86e   : > { %v1937_v27 = vsel %vm1930_vm14, %v2723_v26, 0.0 }
 0x86f   : > { %1938 = vadd.xlane.f32.xlu0 %v1937_v27 }
 0x870   : > { %2807 = shalt.err (!%p2804_p3)
}
 0x871   : > { %s2808_s10 = scalar_lea.hbm %s3461_s8, 64  ;;  %p3480_p10 = pmov %p3479_p2 }
 0x872   : > { %p2809_p7 = scmp.ne.s32.totalorder %s3461_s8, %s2808_s10  ;;  %p2814_p0 = scmp.lt.u32.totalorder %s2808_s10, %s3461_s8 }
 0x874   : > { %p2810_p6 = pnand %p2809_p7, %p3480_p10 }
 0x876   : > { %p2811_p11 = pneg %p2810_p6 }
 0x878   : > { %p2816_p4 = pnand %p2814_p0, %p2811_p11 }
 0x87a   : > { %2819 = shalt.err (!%p2816_p4)
}
 0x87b   : > { %s2943_s21 = smov 32   ;;  %s2944_s26 = smov 2  }
 0x87c   : > { %p3481_p1 = pmov %p3479_p2  ;;  %s1948_s28 = sand.u32 1, %s3019_s17  }
 0x87d   : > { %s2153_s29 = sshll.u32 %s3019_s17, 5  ;;  %s1967_s10 = sshll.u32 %s317_s25, 4  ;;  %s3373_s10 = int_to_ptr.vmem [resolvable:$true] %s1967_s10 }
 0x87e   : > { %2611 = dma.vmem_to_hbm [thread:$0]  (%p3481_p1), %s1978_s18, 64, %s3461_s8, [#allocation11], %s2943_s21, %s2943_s21, %s2944_s26  }
 0x87f   : > { %s1993_s12 = sshll.u32 %s326_s30, 4  ;;  %s3371_s20 = scalar_lea.hbm %s3460_s7, %s2153_s29  ;;  %s3380_s12 = int_to_ptr.vmem [resolvable:$true] %s1993_s12 }
 0x880   : > { %s3378_s26 = scalar_lea.hbm %s3462_s9, %s2153_s29  ;;  %s3385_s30 = scalar_lea.sflag [#allocation6], %s1948_s28 }
 0x881   : > { %s2820_s27 = scalar_lea.vmem %s3373_s10, 32  ;;  %p3482_p5 = scmp.ne.s32.totalorder %s3469_s23, 0 }
 0x882   : > { %p2821_p2 = scmp.ne.s32.totalorder %s3373_s10, %s2820_s27  ;;  %s2945_s22 = smov [#allocation9]  }
 0x883   : > { %s2824_s13 = sshll.u32 %s2945_s22, 4  ;;  %s2825_s13 = int_to_ptr.vmem [resolvable:$false] %s2824_s13 }
 0x884   : > { %p2822_p8 = pnand %p2821_p2, %p3482_p5  ;;  %s2826_s14 = scalar_lea.vmem %s2825_s13, 64 }
 0x885   : > { %p2827_p12 = scmp.lt.s32.totalorder %s3373_s10, %s2825_s13  ;;  %p2828_p13 = scmp.lt.s32.totalorder %s2826_s14, %s2820_s27 }
 0x886   : > { %p2823_p9 = pneg %p2822_p8 }
 0x887   : > { %p2829_p3 = por %p2828_p13, %p2827_p12 }
 0x889   : > { %p2830_p7 = pnand %p2829_p3, %p2823_p9 }
 0x8fc   : > { %v1939_v37 = vpop.xlane.xlu0 %1938 }
 0x8fd   : > { %2724 = vlog2.f32 %v1939_v37 }
 0x907   : > { %v2725_v28 = vpop.eup %2724 }
 0x908   : > { %v1941_v29 = vmul.f32 0.6931472, %v2725_v28 }
 0x90a   : > { %v1942_v30 = vsub.f32 %v1934_v24, %v1941_v29 }
 0x90c   : > { %1943 = vst.msk [vmem:[%s317_s25] sm:$0x3] %vm1930_vm14, %v1942_v30 }
 0x90d   : > { %2833 = shalt.err (!%p2830_p7)
}
 0x90e   : > { %s2834_s11 = scalar_lea.hbm %s3371_s20, 32  ;;  %s2838_s29 = scalar_lea.hbm %s3460_s7, 192 }
 0x90f   : > { %p2835_p10 = scmp.ne.s32.totalorder %s3371_s20, %s2834_s11  ;;  %p2839_p0 = scmp.lt.u32.totalorder %s3371_s20, %s3460_s7 }
 0x910   : > { %p2840_p4 = scmp.lt.u32.totalorder %s2838_s29, %s2834_s11  ;;  %p2842_p2 = scmp.lt.u32.totalorder %s2834_s11, %s3371_s20 }
 0x911   : > { %p2836_p6 = pnand %p2835_p10, %p3482_p5 }
 0x912   : > { %p2841_p1 = por %p2840_p4, %p2839_p0 }
 0x913   : > { %p2837_p11 = pneg %p2836_p6 }
 0x914   : > { %p2843_p8 = por %p2842_p2, %p2841_p1 }
 0x916   : > { %p2844_p9 = pnand %p2843_p8, %p2837_p11 }
 0x918   : > { %2847 = shalt.err (!%p2844_p9)
}
 0x919   : > { %2609 = dma.vmem_to_hbm [thread:$0]  (%p3482_p5), %s3373_s10, 32, %s3371_s20, %s3385_s30  }
 0x91a   : > { %s2848_s27 = scalar_lea.vmem %s3380_s12, 32  ;;  %s2946_s22 = smov [#allocation12]  }
 0x91b   : > { %p2849_p12 = scmp.ne.s32.totalorder %s3380_s12, %s2848_s27  ;;  %s2852_s13 = sshll.u32 %s2946_s22, 4  ;;  %s2853_s13 = int_to_ptr.vmem [resolvable:$false] %s2852_s13 }
 0x91c   : > { %s2854_s14 = scalar_lea.vmem %s2853_s13, 64  ;;  %p2855_p7 = scmp.lt.s32.totalorder %s3380_s12, %s2853_s13 }
 0x91d   : > { %p2850_p13 = pnand %p2849_p12, %p3482_p5  ;;  %p2856_p10 = scmp.lt.s32.totalorder %s2854_s14, %s2848_s27 }
 0x91f   : > { %p2851_p3 = pneg %p2850_p13  ;;  %p2857_p6 = por %p2856_p10, %p2855_p7 }
 0x921   : > { %p2858_p11 = pnand %p2857_p6, %p2851_p3 }
 0x923   : > { %2861 = shalt.err (!%p2858_p11)
}
 0x924   : > { %s2862_s10 = scalar_lea.hbm %s3378_s26, 32  ;;  %s2866_s25 = scalar_lea.hbm %s3462_s9, 192 }
 0x925   : > { %p2863_p0 = scmp.ne.s32.totalorder %s3378_s26, %s2862_s10  ;;  %p2867_p2 = scmp.lt.u32.totalorder %s3378_s26, %s3462_s9 }
 0x926   : > { %p2868_p8 = scmp.lt.u32.totalorder %s2866_s25, %s2862_s10  ;;  %p2870_p12 = scmp.lt.u32.totalorder %s2862_s10, %s3378_s26 }
 0x927   : > { %p2864_p4 = pnand %p2863_p0, %p3482_p5 }
 0x928   : > { %p2869_p9 = por %p2868_p8, %p2867_p2 }
 0x929   : > { %p2865_p1 = pneg %p2864_p4 }
 0x92a   : > { %p2871_p13 = por %p2870_p12, %p2869_p9 }
 0x92c   : > { %p2872_p3 = pnand %p2871_p13, %p2865_p1 }
 0x92e   : > { %2875 = shalt.err (!%p2872_p3)
}
 0x92f   : > { %2612 = dma.vmem_to_hbm [thread:$0]  (%p3482_p5), %s3380_s12, 32, %s3378_s26, %s3385_s30  }
 0x930   : > { %p3483_p7 = scmp.eq.s32.totalorder %s3019_s17, 5 }
 0x932   : > { %2903 = dma.done.wait (%p3483_p7), [#allocation11], 64   ;;  %p3484_p10 = pmov %p3483_p7 }
 0x934   : > { %2905 = vsyncadd (%p3484_p10), [#allocation11], 4294967232 }
 0x935 PF: > { %p2637_p6 = scmp.ge.s32.totalorder %s2924_s16, 2  ;;  %s3485_s18 = sadd.s32 4294967294, %s2924_s16  }
 0x936   : > { %s2009_s21 = sand.u32 1, %s3485_s18   ;;  %p3486_p11 = scmp.ne.s32.totalorder %s3470_s24, 0 }
 0x937   : > { %s2010_s23 = scalar_lea.sflag [#allocation6], %s2009_s21 }
 0x938   : > { %p2625_p0 = pnand %p2637_p6, %p3486_p11 }
 0x93a   : > { %2907 = dma.done.wait (!%p2625_p0), %s2010_s23, 64  }
 0x93b   : > { %2909 = vsyncadd (!%p2625_p0), %s2010_s23, 4294967232  ;;  %s3487_s12 = sld [smem:[#allocation18_spill]]  ;;  %p29_p5 = scmp.ge.s32.totalorder %s3023_s19, 8  }
 0x93c   : > { %s3488_s14 = smov %s2916_s0  ;;  %s3489_s0 = smov %s2920_s15 }
 0x93d   : > { %s3491_s16 = smov %s3023_s19  ;;  %31 = sbr.rel (!%p29_p5) target bundleno = 21 (0x15), region = 128 }
 0x941   : > { %s3490_s15 = smov %s3487_s12 }
 0x944   :  { %2024 = vsyncpa [#allocation5], 1 }
 0x945   :  { %2026 = vsyncpa [#allocation5 + $0x1], 1 }
 0x946   :  { %2027 = vsyncpa [#allocation8], 1 }
 0x947   :  { %2028 = vsyncpa [#allocation6], 1 }
 0x948   :  { %2030 = vsyncpa [#allocation6 + $0x1], 1 }
 0x949   :  { %2031 = vsyncpa [#allocation11], 1 }

</bundles_post_ra>
